<compile_context>
chip_gen: v5e
topology: v5e:2x2
jax: 0.10.0
libtpu: 0.0.40
codegen_flags: <defaults>
</compile_context>

<pallas_src>
import math

import jax
import jax.numpy as jnp
from jax import lax
from jax.experimental import pallas as pl
from jax.experimental.pallas import tpu as pltpu

DT = 0.1
S_DIM = 6                 # (x, y, theta, u, v, r)
A_DIM = 3                 # (Fx, Fy, Tz)
IN_SIZE = 6               # sDim - 3 + aDim
OUT_SIZE = 3              # sDim - 3
HIDDEN = 5                # rnn_hidden_size
FC_HIDDEN = 32
NET_ROWS = IN_SIZE + HIDDEN   # 11 : [u, v, r, Fx, Fy, Tz, h0(5)]
LANE = 128
SUB_CHUNK = 8                 # geometry inner-loop chunk: one (8,128) vreg per temp
LANE_CHUNK = 2048             # network inner-loop lane chunk (bounds f32 intermediates)
MAX_TKS = 256                 # max sublane-tiles per grid step -> 32768 elems / step
PI = math.pi
TWO_PI = 2.0 * math.pi


def _round_up(x, m):
    return (x + m - 1) // m * m


# ---------------------------------------------------------------------------
# Kernel 1: AUVRNN2DDeltaV  (single-step RNN, no bias, + Linear/LeakyReLU/Linear)
# ---------------------------------------------------------------------------
def _deltav_kernel(xin_ref, w_rnn_ref, w_fc1_ref, w_fc2_ref, dv_ref, h1_ref):
    """Feature-major (rows, lanes) network pass: MXU bf16 matmuls, f32 accumulation.

    The input slab holds exactly the 11 rows the fused [W_ih | W_hh] matmul needs,
    so there is no cross-tile row slice.  An inner loop over lane chunks keeps the
    (32, chunk) f32 intermediate small even with 32K-lane grid tiles.
    """
    tk = xin_ref.shape[1]
    chl = min(LANE_CHUNK, tk)
    nchunks = tk // chl
    w_rnn = w_rnn_ref[...]          # (5, 11) bf16 — read once per grid step
    w_fc1 = w_fc1_ref[...]          # (32, 5) bf16
    w_fc2 = w_fc2_ref[...]          # (3, 32) bf16

    def body(c, carry):
        off = pl.multiple_of(c * chl, LANE)
        x = xin_ref[:, pl.ds(off, chl)]                                   # (11, chl) bf16
        h = jnp.tanh(jnp.dot(w_rnn, x, preferred_element_type=jnp.float32))      # (5, chl)
        f = jnp.dot(w_fc1, h.astype(jnp.bfloat16),
                    preferred_element_type=jnp.float32)                           # (32, chl)
        f = jnp.maximum(f, 0.1 * f)                                       # LeakyReLU(0.1)
        dv = jnp.dot(w_fc2, f.astype(jnp.bfloat16),
                     preferred_element_type=jnp.float32)                          # (3, chl)
        h1_ref[:, pl.ds(off, chl)] = h
        dv_ref[:, pl.ds(off, chl)] = dv
        return carry

    lax.fori_loop(0, nchunks, body, 0)


# ---------------------------------------------------------------------------
# Kernel 2: SE(2) state update with the batch dense over (sublane, lane)
# ---------------------------------------------------------------------------
def _se2_step_kernel(geo_ref, dv_ref, out_ref):
    """geo_ref: (6, TKS, 128) rows [x, y, th, u, v, r]; dv_ref: (3, TKS, 128);
    out_ref: (6, TKS, 128) rows [x', y', th', u', v', r'].

    All temporaries are dense (SUB_CHUNK, 128) arrays; the inner loop over
    sublane chunks of 8 keeps live vreg count ~30 (no spills) and results are
    stored row-by-row directly into out_ref (no concatenate)."""
    tks = geo_ref.shape[1]
    nchunks = tks // SUB_CHUNK

    def body(cix, carry):
        sl = pl.ds(pl.multiple_of(cix * SUB_CHUNK, SUB_CHUNK), SUB_CHUNK)
        xp = geo_ref[0, sl, :]
        yp = geo_ref[1, sl, :]
        th = geo_ref[2, sl, :]
        u = geo_ref[3, sl, :]
        v = geo_ref[4, sl, :]
        r = geo_ref[5, sl, :]
        dv0 = dv_ref[0, sl, :]
        dv1 = dv_ref[1, sl, :]
        dv2 = dv_ref[2, sl, :]

        c = jnp.cos(th)
        sn = jnp.sin(th)

        # twist t = v_body * dt ; SE(2) exponential map (half-angle form so
        # (1 - cos t)/t has no catastrophic cancellation in f32).
        tx = u * DT
        ty = v * DT
        tth = r * DT
        hh = 0.5 * tth
        sh = jnp.sin(hh)
        ch = jnp.cos(hh)
        st = 2.0 * sh * ch            # sin(tth)
        two_sh2 = 2.0 * sh * sh       # 1 - cos(tth)
        ct = 1.0 - two_sh2            # cos(tth)

        small = jnp.abs(tth) < 1e-6
        safe = jnp.where(small, 1.0, tth)
        inv = pl.reciprocal(safe, approx=True)     # EUP slot (otherwise idle)
        inv = inv * (2.0 - safe * inv)              # one Newton step -> near-f32
        A = jnp.where(small, 1.0 - tth * tth * (1.0 / 6.0), st * inv)
        B = jnp.where(small, 0.5 * tth, two_sh2 * inv)
        trans_x = A * tx - B * ty
        trans_y = B * tx + A * ty

        # M_next = M_cur @ Exp(t)
        pnx = xp + c * trans_x - sn * trans_y
        pny = yp + sn * trans_x + c * trans_y
        thn = th + tth
        # TODO(synk): wrap assumes the reference FlattenSE2 recovers theta via
        # atan2 of R_next (-> (-pi, pi]); drop these two lines if it carries the
        # raw accumulated angle instead.
        thn = jnp.where(thn > PI, thn - TWO_PI, thn)
        thn = jnp.where(thn <= -PI, thn + TWO_PI, thn)
        # angle addition instead of 2 extra trig calls
        cn = c * ct - sn * st
        snn = sn * ct + c * st

        # M_next_inv translation: -R_next^T @ p_next
        pix = -(cn * pnx + snn * pny)
        piy = snn * pnx - cn * pny

        # v_i = Adj(M_cur) @ v_body ;  v_i_next = v_i + dv
        w0 = (c * u - sn * v + yp * r) + dv0
        w1 = (sn * u + c * v - xp * r) + dv1
        w2 = r + dv2

        # v_next = Adj(M_next_inv) @ v_i_next
        vn0 = cn * w0 + snn * w1 + piy * w2
        vn1 = -snn * w0 + cn * w1 - pix * w2
        vn2 = w2

        out_ref[0, sl, :] = pnx
        out_ref[1, sl, :] = pny
        out_ref[2, sl, :] = thn
        out_ref[3, sl, :] = vn0
        out_ref[4, sl, :] = vn1
        out_ref[5, sl, :] = vn2
        return carry

    lax.fori_loop(0, nchunks, body, 0)


# ---------------------------------------------------------------------------
# Wrapper
# ---------------------------------------------------------------------------
def prepare_params(params):
    """One-time weight prep (hoist out of rollout loops): fuse [W_ih | W_hh], cast bf16."""
    w_rnn = jnp.concatenate([params["w_ih"], params["w_hh"]], axis=1)     # (5, 11)
    return {
        "w_rnn": w_rnn.astype(jnp.bfloat16),
        "w_fc1": params["w_fc1"].astype(jnp.bfloat16),                    # (32, 5)
        "w_fc2": params["w_fc2"].astype(jnp.bfloat16),                    # (3, 32)
    }


def auv_rnn2d_step(s, a, prepped, h0=None):
    """s: (K, 1, 6), a: (K, 1, 3), h0: (1, K, 5) or None.

    Returns (s_next (K, 1, 6), dv (K, 3), hN (1, K, 5))."""
    k, hist, sdim = s.shape
    assert hist == 1 and sdim == S_DIM and a.shape == (k, 1, A_DIM)
    if h0 is None:
        h0 = jnp.zeros((1, k, HIDDEN), jnp.float32)

    # ---- batch tiling: sublane-tiles of 128-lane columns ---------------------
    ks = -(-k // LANE)                                   # batch in units of 128
    # >= 2 grid tiles for big batches (both v7x TCs busy); cap at 256 sublane
    # tiles (32768 elems/step) which stays under v5e's 16 MiB default scoped VMEM.
    tks = min(MAX_TKS, _round_up(max(-(-ks // 2), 1), 16))
    ks_pad = _round_up(ks, tks)
    kp = ks_pad * LANE
    grid = ks_pad // tks
    tk = tks * LANE

    s_last = s[:, -1, :].astype(jnp.float32)             # (K, 6)
    a_last = a[:, -1, :].astype(jnp.float32)             # (K, 3)
    h0_last = h0[0].astype(jnp.float32)                  # (K, 5)

    # TODO(synk): for rollouts, keep the state feature-major end-to-end (and fuse
    # timesteps into one pallas_call) to drop these per-step transposes/pads.
    net = jnp.concatenate([s_last[:, 3:], a_last, h0_last], axis=1).T     # (11, K)
    net = jnp.pad(net, ((0, 0), (0, kp - k))).astype(jnp.bfloat16)        # (11, KP)

    geo = jnp.pad(s_last.T, ((0, 0), (0, kp - k)))                        # (6, KP) f32
    geo3 = geo.reshape(S_DIM, ks_pad, LANE)                               # free reshape

    # ---- kernel 1: delta-v network -------------------------------------------
    dv2d, h1_2d = pl.pallas_call(
        _deltav_kernel,
        grid=(grid,),
        in_specs=[
            pl.BlockSpec((NET_ROWS, tk), lambda i: (0, i)),
            pl.BlockSpec((HIDDEN, NET_ROWS), lambda i: (0, 0)),
            pl.BlockSpec((FC_HIDDEN, HIDDEN), lambda i: (0, 0)),
            pl.BlockSpec((OUT_SIZE, FC_HIDDEN), lambda i: (0, 0)),
        ],
        out_specs=[
            pl.BlockSpec((OUT_SIZE, tk), lambda i: (0, i)),
            pl.BlockSpec((HIDDEN, tk), lambda i: (0, i)),
        ],
        out_shape=(jax.ShapeDtypeStruct((OUT_SIZE, kp), jnp.float32),
                   jax.ShapeDtypeStruct((HIDDEN, kp), jnp.float32)),
        compiler_params=pltpu.CompilerParams(dimension_semantics=("parallel",)),
    )(net, prepped["w_rnn"], prepped["w_fc1"], prepped["w_fc2"])

    # ---- kernel 2: SE(2) geometry (dv crosses layouts via a free HBM reshape) --
    out2 = pl.pallas_call(
        _se2_step_kernel,
        grid=(grid,),
        in_specs=[
            pl.BlockSpec((S_DIM, tks, LANE), lambda i: (0, i, 0)),
            pl.BlockSpec((OUT_SIZE, tks, LANE), lambda i: (0, i, 0)),
        ],
        out_specs=pl.BlockSpec((S_DIM, tks, LANE), lambda i: (0, i, 0)),
        out_shape=jax.ShapeDtypeStruct((S_DIM, ks_pad, LANE), jnp.float32),
        compiler_params=pltpu.CompilerParams(dimension_semantics=("parallel",)),
    )(geo3, dv2d.reshape(OUT_SIZE, ks_pad, LANE))

    s_next = out2.reshape(S_DIM, kp)[:, :k].T[:, None, :]     # (K, 1, 6)
    dv = dv2d[:, :k].T                                        # (K, 3)
    hN = h1_2d[:, :k].T[None]                                 # (1, K, 5)
    return s_next, dv, hN


def init_params(key):
    """Deterministic parameter init mirroring PyTorch default uniform ranges."""
    k_ih, k_hh, k_f1, k_f2 = jax.random.split(key, 4)
    b_rnn = 1.0 / (HIDDEN ** 0.5)
    b_f1 = 1.0 / (HIDDEN ** 0.5)
    b_f2 = 1.0 / (FC_HIDDEN ** 0.5)
    return {
        "w_ih": jax.random.uniform(k_ih, (HIDDEN, IN_SIZE), jnp.float32, -b_rnn, b_rnn),
        "w_hh": jax.random.uniform(k_hh, (HIDDEN, HIDDEN), jnp.float32, -b_rnn, b_rnn),
        "w_fc1": jax.random.uniform(k_f1, (FC_HIDDEN, HIDDEN), jnp.float32, -b_f1, b_f1),
        "w_fc2": jax.random.uniform(k_f2, (OUT_SIZE, FC_HIDDEN), jnp.float32, -b_f2, b_f2),
    }


if __name__ == "__main__":
    key = jax.random.PRNGKey(0)
    k_s, k_a, k_p = jax.random.split(key, 3)

    K = 8  # batch
    s = jax.random.uniform(k_s, (K, 1, S_DIM), jnp.float32, -1.0, 1.0)
    a = jax.random.uniform(k_a, (K, 1, A_DIM), jnp.float32, -1.0, 1.0)
    params = init_params(k_p)
    prepped = prepare_params(params)   # one-time weight fusion / bf16 cast

    step = jax.jit(lambda s_, a_: auv_rnn2d_step(s_, a_, prepped))
    s_next, dv, hN = step(s, a)
    jax.block_until_ready((s_next, dv, hN))

    assert s_next.shape == (K, 1, S_DIM)
    assert dv.shape == (K, OUT_SIZE)
    assert hN.shape == (1, K, HIDDEN)
    assert bool(jnp.all(jnp.isfinite(s_next))) and bool(jnp.all(jnp.isfinite(dv)))
    print("KERNEL_OK")
</pallas_src>

<mosaic_0001>
module attributes {stable_mosaic.version = 11 : i64} {
  func.func @_deltav_kernel(%arg0: i32, %arg1: memref<11x2048xbf16, #tpu.memory_space<vmem>>, %arg2: memref<5x11xbf16, #tpu.memory_space<vmem>>, %arg3: memref<32x5xbf16, #tpu.memory_space<vmem>>, %arg4: memref<3x32xbf16, #tpu.memory_space<vmem>>, %arg5: memref<3x2048xf32, #tpu.memory_space<vmem>>, %arg6: memref<5x2048xf32, #tpu.memory_space<vmem>>) attributes {dimension_semantics = [#tpu.dimension_semantics<parallel>], iteration_bounds = array<i64: 1>, scalar_prefetch = 0 : i64, scratch_operands = 0 : i64, tpu.core_type = #tpu.core_type<tc>, window_params = [{transform_indices = @transform_0, window_bounds = array<i64: 11, 2048>}, {pipeline_mode = #tpu.pipeline_mode<synchronous>, transform_indices = @transform_1, window_bounds = array<i64: 5, 11>}, {pipeline_mode = #tpu.pipeline_mode<synchronous>, transform_indices = @transform_2, window_bounds = array<i64: 32, 5>}, {pipeline_mode = #tpu.pipeline_mode<synchronous>, transform_indices = @transform_3, window_bounds = array<i64: 3, 32>}, {transform_indices = @transform_4, window_bounds = array<i64: 3, 2048>}, {transform_indices = @transform_5, window_bounds = array<i64: 5, 2048>}]} {
    %c0 = arith.constant 0 : index
    %c0_0 = arith.constant 0 : index
    %0 = vector.load %arg2[%c0, %c0_0] : memref<5x11xbf16, #tpu.memory_space<vmem>>, vector<5x11xbf16>
    %c0_1 = arith.constant 0 : index
    %c0_2 = arith.constant 0 : index
    %1 = vector.load %arg3[%c0_1, %c0_2] : memref<32x5xbf16, #tpu.memory_space<vmem>>, vector<32x5xbf16>
    %c0_3 = arith.constant 0 : index
    %c0_4 = arith.constant 0 : index
    %2 = vector.load %arg4[%c0_3, %c0_4] : memref<3x32xbf16, #tpu.memory_space<vmem>>, vector<3x32xbf16>
    %c0_i32 = arith.constant 0 : i32
    %c2048_i32 = arith.constant 2048 : i32
    %3 = arith.muli %c0_i32, %c2048_i32 : i32
    %4 = tpu.assume_multiple %3, 128 : i32
    %c0_5 = arith.constant 0 : index
    %5 = arith.index_cast %4 : i32 to index
    %6 = vector.load %arg1[%c0_5, %5] : memref<11x2048xbf16, #tpu.memory_space<vmem>>, vector<11x2048xbf16>
    %cst = arith.constant dense<0.000000e+00> : vector<5x2048xf32>
    %7 = tpu.matmul %0, %6, %cst {dimension_numbers = #tpu.dot_dimension_numbers<[1], [0], [0], [1], [0, 0, 1, 1], [], []>} : vector<5x11xbf16>, vector<11x2048xbf16>, vector<5x2048xf32> -> vector<5x2048xf32>
    %8 = math.tanh %7 : vector<5x2048xf32>
    %9 = arith.truncf %8 : vector<5x2048xf32> to vector<5x2048xbf16>
    %cst_6 = arith.constant dense<0.000000e+00> : vector<32x2048xf32>
    %10 = tpu.matmul %1, %9, %cst_6 {dimension_numbers = #tpu.dot_dimension_numbers<[1], [0], [0], [1], [0, 0, 1, 1], [], []>} : vector<32x5xbf16>, vector<5x2048xbf16>, vector<32x2048xf32> -> vector<32x2048xf32>
    %cst_7 = arith.constant 1.000000e-01 : f32
    %11 = vector.broadcast %cst_7 : f32 to vector<32x2048xf32>
    %12 = arith.mulf %11, %10 : vector<32x2048xf32>
    %13 = arith.maximumf %10, %12 : vector<32x2048xf32>
    %14 = arith.truncf %13 : vector<32x2048xf32> to vector<32x2048xbf16>
    %cst_8 = arith.constant dense<0.000000e+00> : vector<3x2048xf32>
    %15 = tpu.matmul %2, %14, %cst_8 {dimension_numbers = #tpu.dot_dimension_numbers<[1], [0], [0], [1], [0, 0, 1, 1], [], []>} : vector<3x32xbf16>, vector<32x2048xbf16>, vector<3x2048xf32> -> vector<3x2048xf32>
    %c0_9 = arith.constant 0 : index
    %16 = arith.index_cast %4 : i32 to index
    %17 = vector.load %arg6[%c0_9, %16] : memref<5x2048xf32, #tpu.memory_space<vmem>>, vector<5x2048xf32>
    tpu.vector_store %arg6[%c0_9, %16], %8 {strides = array<i32>} : memref<5x2048xf32, #tpu.memory_space<vmem>>, vector<5x2048xf32>,
    %c0_10 = arith.constant 0 : index
    %18 = arith.index_cast %4 : i32 to index
    %19 = vector.load %arg5[%c0_10, %18] : memref<3x2048xf32, #tpu.memory_space<vmem>>, vector<3x2048xf32>
    tpu.vector_store %arg5[%c0_10, %18], %15 {strides = array<i32>} : memref<3x2048xf32, #tpu.memory_space<vmem>>, vector<3x2048xf32>,
    %c1_i32 = arith.constant 1 : i32
    return
  }
  func.func @transform_0(%arg0: i32) -> (i32, i32) {
    %c0_i32 = arith.constant 0 : i32
    %c0_i32_0 = arith.constant 0 : i32
    return %c0_i32, %arg0 : i32, i32
  }
  func.func @transform_1(%arg0: i32) -> (i32, i32) {
    %c0_i32 = arith.constant 0 : i32
    %c0_i32_0 = arith.constant 0 : i32
    %c0_i32_1 = arith.constant 0 : i32
    return %c0_i32, %c0_i32_0 : i32, i32
  }
  func.func @transform_2(%arg0: i32) -> (i32, i32) {
    %c0_i32 = arith.constant 0 : i32
    %c0_i32_0 = arith.constant 0 : i32
    %c0_i32_1 = arith.constant 0 : i32
    return %c0_i32, %c0_i32_0 : i32, i32
  }
  func.func @transform_3(%arg0: i32) -> (i32, i32) {
    %c0_i32 = arith.constant 0 : i32
    %c0_i32_0 = arith.constant 0 : i32
    %c0_i32_1 = arith.constant 0 : i32
    return %c0_i32, %c0_i32_0 : i32, i32
  }
  func.func @transform_4(%arg0: i32) -> (i32, i32) {
    %c0_i32 = arith.constant 0 : i32
    %c0_i32_0 = arith.constant 0 : i32
    return %c0_i32, %arg0 : i32, i32
  }
  func.func @transform_5(%arg0: i32) -> (i32, i32) {
    %c0_i32 = arith.constant 0 : i32
    %c0_i32_0 = arith.constant 0 : i32
    return %c0_i32, %arg0 : i32, i32
  }
}

module attributes {stable_mosaic.version = 11 : i64} {
  func.func @_se2_step_kernel(%arg0: i32, %arg1: memref<6x16x128xf32, #tpu.memory_space<vmem>>, %arg2: memref<3x16x128xf32, #tpu.memory_space<vmem>>, %arg3: memref<6x16x128xf32, #tpu.memory_space<vmem>>) attributes {dimension_semantics = [#tpu.dimension_semantics<parallel>], iteration_bounds = array<i64: 1>, scalar_prefetch = 0 : i64, scratch_operands = 0 : i64, tpu.core_type = #tpu.core_type<tc>, window_params = [{transform_indices = @transform_0, window_bounds = array<i64: 6, 16, 128>}, {transform_indices = @transform_1, window_bounds = array<i64: 3, 16, 128>}, {transform_indices = @transform_2, window_bounds = array<i64: 6, 16, 128>}]} {
    %c0_i32 = arith.constant 0 : i32
    %c2_i32 = arith.constant 2 : i32
    %0 = arith.addi %c0_i32, %c2_i32 : i32
    %c1_i32 = arith.constant 1 : i32
    scf.for %arg4 = %c0_i32 to %0 step %c1_i32  : i32 {
      %c8_i32 = arith.constant 8 : i32
      %1 = arith.muli %arg4, %c8_i32 : i32
      %2 = tpu.assume_multiple %1, 8 : i32
      %c0 = arith.constant 0 : index
      %3 = arith.index_cast %2 : i32 to index
      %c0_1 = arith.constant 0 : index
      %4 = vector.load %arg1[%c0, %3, %c0_1] : memref<6x16x128xf32, #tpu.memory_space<vmem>>, vector<1x8x128xf32>
      %5 = vector.shape_cast %4 : vector<1x8x128xf32> to vector<8x128xf32>
      %c1 = arith.constant 1 : index
      %6 = arith.index_cast %2 : i32 to index
      %c0_2 = arith.constant 0 : index
      %7 = vector.load %arg1[%c1, %6, %c0_2] : memref<6x16x128xf32, #tpu.memory_space<vmem>>, vector<1x8x128xf32>
      %8 = vector.shape_cast %7 : vector<1x8x128xf32> to vector<8x128xf32>
      %c2 = arith.constant 2 : index
      %9 = arith.index_cast %2 : i32 to index
      %c0_3 = arith.constant 0 : index
      %10 = vector.load %arg1[%c2, %9, %c0_3] : memref<6x16x128xf32, #tpu.memory_space<vmem>>, vector<1x8x128xf32>
      %11 = vector.shape_cast %10 : vector<1x8x128xf32> to vector<8x128xf32>
      %c3 = arith.constant 3 : index
      %12 = arith.index_cast %2 : i32 to index
      %c0_4 = arith.constant 0 : index
      %13 = vector.load %arg1[%c3, %12, %c0_4] : memref<6x16x128xf32, #tpu.memory_space<vmem>>, vector<1x8x128xf32>
      %14 = vector.shape_cast %13 : vector<1x8x128xf32> to vector<8x128xf32>
      %c4 = arith.constant 4 : index
      %15 = arith.index_cast %2 : i32 to index
      %c0_5 = arith.constant 0 : index
      %16 = vector.load %arg1[%c4, %15, %c0_5] : memref<6x16x128xf32, #tpu.memory_space<vmem>>, vector<1x8x128xf32>
      %17 = vector.shape_cast %16 : vector<1x8x128xf32> to vector<8x128xf32>
      %c5 = arith.constant 5 : index
      %18 = arith.index_cast %2 : i32 to index
      %c0_6 = arith.constant 0 : index
      %19 = vector.load %arg1[%c5, %18, %c0_6] : memref<6x16x128xf32, #tpu.memory_space<vmem>>, vector<1x8x128xf32>
      %20 = vector.shape_cast %19 : vector<1x8x128xf32> to vector<8x128xf32>
      %c0_7 = arith.constant 0 : index
      %21 = arith.index_cast %2 : i32 to index
      %c0_8 = arith.constant 0 : index
      %22 = vector.load %arg2[%c0_7, %21, %c0_8] : memref<3x16x128xf32, #tpu.memory_space<vmem>>, vector<1x8x128xf32>
      %23 = vector.shape_cast %22 : vector<1x8x128xf32> to vector<8x128xf32>
      %c1_9 = arith.constant 1 : index
      %24 = arith.index_cast %2 : i32 to index
      %c0_10 = arith.constant 0 : index
      %25 = vector.load %arg2[%c1_9, %24, %c0_10] : memref<3x16x128xf32, #tpu.memory_space<vmem>>, vector<1x8x128xf32>
      %26 = vector.shape_cast %25 : vector<1x8x128xf32> to vector<8x128xf32>
      %c2_11 = arith.constant 2 : index
      %27 = arith.index_cast %2 : i32 to index
      %c0_12 = arith.constant 0 : index
      %28 = vector.load %arg2[%c2_11, %27, %c0_12] : memref<3x16x128xf32, #tpu.memory_space<vmem>>, vector<1x8x128xf32>
      %29 = vector.shape_cast %28 : vector<1x8x128xf32> to vector<8x128xf32>
      %30 = math.cos %11 : vector<8x128xf32>
      %31 = math.sin %11 : vector<8x128xf32>
      %cst = arith.constant 1.000000e-01 : f32
      %32 = vector.broadcast %cst : f32 to vector<8x128xf32>
      %33 = arith.mulf %14, %32 : vector<8x128xf32>
      %cst_13 = arith.constant 1.000000e-01 : f32
      %34 = vector.broadcast %cst_13 : f32 to vector<8x128xf32>
      %35 = arith.mulf %17, %34 : vector<8x128xf32>
      %cst_14 = arith.constant 1.000000e-01 : f32
      %36 = vector.broadcast %cst_14 : f32 to vector<8x128xf32>
      %37 = arith.mulf %20, %36 : vector<8x128xf32>
      %cst_15 = arith.constant 5.000000e-01 : f32
      %38 = vector.broadcast %cst_15 : f32 to vector<8x128xf32>
      %39 = arith.mulf %38, %37 : vector<8x128xf32>
      %40 = math.sin %39 : vector<8x128xf32>
      %41 = math.cos %39 : vector<8x128xf32>
      %cst_16 = arith.constant 2.000000e+00 : f32
      %42 = vector.broadcast %cst_16 : f32 to vector<8x128xf32>
      %43 = arith.mulf %42, %40 : vector<8x128xf32>
      %44 = arith.mulf %43, %41 : vector<8x128xf32>
      %cst_17 = arith.constant 2.000000e+00 : f32
      %45 = vector.broadcast %cst_17 : f32 to vector<8x128xf32>
      %46 = arith.mulf %45, %40 : vector<8x128xf32>
      %47 = arith.mulf %46, %40 : vector<8x128xf32>
      %cst_18 = arith.constant 1.000000e+00 : f32
      %48 = vector.broadcast %cst_18 : f32 to vector<8x128xf32>
      %49 = arith.subf %48, %47 : vector<8x128xf32>
      %50 = math.absf %37 : vector<8x128xf32>
      %cst_19 = arith.constant 9.99999997E-7 : f32
      %51 = vector.broadcast %cst_19 : f32 to vector<8x128xf32>
      %52 = arith.cmpf olt, %50, %51 : vector<8x128xf32>
      %cst_20 = arith.constant 1.000000e+00 : f32
      %53 = vector.broadcast %cst_20 : f32 to vector<8x128xf32>
      %54 = arith.select %52, %53, %37 : vector<8x128xi1>, vector<8x128xf32>
      %55 = tpu.reciprocal %54 {approx = true} : vector<8x128xf32> -> vector<8x128xf32>
      %56 = arith.mulf %54, %55 : vector<8x128xf32>
      %cst_21 = arith.constant 2.000000e+00 : f32
      %57 = vector.broadcast %cst_21 : f32 to vector<8x128xf32>
      %58 = arith.subf %57, %56 : vector<8x128xf32>
      %59 = arith.mulf %55, %58 : vector<8x128xf32>
      %60 = arith.mulf %37, %37 : vector<8x128xf32>
      %cst_22 = arith.constant 0.166666672 : f32
      %61 = vector.broadcast %cst_22 : f32 to vector<8x128xf32>
      %62 = arith.mulf %60, %61 : vector<8x128xf32>
      %cst_23 = arith.constant 1.000000e+00 : f32
      %63 = vector.broadcast %cst_23 : f32 to vector<8x128xf32>
      %64 = arith.subf %63, %62 : vector<8x128xf32>
      %65 = arith.mulf %44, %59 : vector<8x128xf32>
      %66 = arith.select %52, %64, %65 : vector<8x128xi1>, vector<8x128xf32>
      %cst_24 = arith.constant 5.000000e-01 : f32
      %67 = vector.broadcast %cst_24 : f32 to vector<8x128xf32>
      %68 = arith.mulf %67, %37 : vector<8x128xf32>
      %69 = arith.mulf %47, %59 : vector<8x128xf32>
      %70 = arith.select %52, %68, %69 : vector<8x128xi1>, vector<8x128xf32>
      %71 = arith.mulf %66, %33 : vector<8x128xf32>
      %72 = arith.mulf %70, %35 : vector<8x128xf32>
      %73 = arith.subf %71, %72 : vector<8x128xf32>
      %74 = arith.mulf %70, %33 : vector<8x128xf32>
      %75 = arith.mulf %66, %35 : vector<8x128xf32>
      %76 = arith.addf %74, %75 : vector<8x128xf32>
      %77 = arith.mulf %30, %73 : vector<8x128xf32>
      %78 = arith.addf %5, %77 : vector<8x128xf32>
      %79 = arith.mulf %31, %76 : vector<8x128xf32>
      %80 = arith.subf %78, %79 : vector<8x128xf32>
      %81 = arith.mulf %31, %73 : vector<8x128xf32>
      %82 = arith.addf %8, %81 : vector<8x128xf32>
      %83 = arith.mulf %30, %76 : vector<8x128xf32>
      %84 = arith.addf %82, %83 : vector<8x128xf32>
      %85 = arith.addf %11, %37 : vector<8x128xf32>
      %cst_25 = arith.constant 3.14159274 : f32
      %86 = vector.broadcast %cst_25 : f32 to vector<8x128xf32>
      %87 = arith.cmpf ogt, %85, %86 : vector<8x128xf32>
      %cst_26 = arith.constant 6.28318548 : f32
      %88 = vector.broadcast %cst_26 : f32 to vector<8x128xf32>
      %89 = arith.subf %85, %88 : vector<8x128xf32>
      %90 = arith.select %87, %89, %85 : vector<8x128xi1>, vector<8x128xf32>
      %cst_27 = arith.constant -3.14159274 : f32
      %91 = vector.broadcast %cst_27 : f32 to vector<8x128xf32>
      %92 = arith.cmpf ole, %90, %91 : vector<8x128xf32>
      %cst_28 = arith.constant 6.28318548 : f32
      %93 = vector.broadcast %cst_28 : f32 to vector<8x128xf32>
      %94 = arith.addf %90, %93 : vector<8x128xf32>
      %95 = arith.select %92, %94, %90 : vector<8x128xi1>, vector<8x128xf32>
      %96 = arith.mulf %30, %49 : vector<8x128xf32>
      %97 = arith.mulf %31, %44 : vector<8x128xf32>
      %98 = arith.subf %96, %97 : vector<8x128xf32>
      %99 = arith.mulf %31, %49 : vector<8x128xf32>
      %100 = arith.mulf %30, %44 : vector<8x128xf32>
      %101 = arith.addf %99, %100 : vector<8x128xf32>
      %102 = arith.mulf %98, %80 : vector<8x128xf32>
      %103 = arith.mulf %101, %84 : vector<8x128xf32>
      %104 = arith.addf %102, %103 : vector<8x128xf32>
      %cst_29 = arith.constant 0.000000e+00 : f32
      %105 = vector.broadcast %cst_29 : f32 to vector<8x128xf32>
      %106 = arith.subf %105, %104 : vector<8x128xf32>
      %107 = arith.mulf %101, %80 : vector<8x128xf32>
      %108 = arith.mulf %98, %84 : vector<8x128xf32>
      %109 = arith.subf %107, %108 : vector<8x128xf32>
      %110 = arith.mulf %30, %14 : vector<8x128xf32>
      %111 = arith.mulf %31, %17 : vector<8x128xf32>
      %112 = arith.subf %110, %111 : vector<8x128xf32>
      %113 = arith.mulf %8, %20 : vector<8x128xf32>
      %114 = arith.addf %112, %113 : vector<8x128xf32>
      %115 = arith.addf %114, %23 : vector<8x128xf32>
      %116 = arith.mulf %31, %14 : vector<8x128xf32>
      %117 = arith.mulf %30, %17 : vector<8x128xf32>
      %118 = arith.addf %116, %117 : vector<8x128xf32>
      %119 = arith.mulf %5, %20 : vector<8x128xf32>
      %120 = arith.subf %118, %119 : vector<8x128xf32>
      %121 = arith.addf %120, %26 : vector<8x128xf32>
      %122 = arith.addf %20, %29 : vector<8x128xf32>
      %123 = arith.mulf %98, %115 : vector<8x128xf32>
      %124 = arith.mulf %101, %121 : vector<8x128xf32>
      %125 = arith.addf %123, %124 : vector<8x128xf32>
      %126 = arith.mulf %109, %122 : vector<8x128xf32>
      %127 = arith.addf %125, %126 : vector<8x128xf32>
      %cst_30 = arith.constant 0.000000e+00 : f32
      %128 = vector.broadcast %cst_30 : f32 to vector<8x128xf32>
      %129 = arith.subf %128, %101 : vector<8x128xf32>
      %130 = arith.mulf %129, %115 : vector<8x128xf32>
      %131 = arith.mulf %98, %121 : vector<8x128xf32>
      %132 = arith.addf %130, %131 : vector<8x128xf32>
      %133 = arith.mulf %106, %122 : vector<8x128xf32>
      %134 = arith.subf %132, %133 : vector<8x128xf32>
      %c0_31 = arith.constant 0 : index
      %135 = arith.index_cast %2 : i32 to index
      %c0_32 = arith.constant 0 : index
      %136 = vector.load %arg3[%c0_31, %135, %c0_32] : memref<6x16x128xf32, #tpu.memory_space<vmem>>, vector<1x8x128xf32>
      %137 = vector.shape_cast %136 : vector<1x8x128xf32> to vector<8x128xf32>
      %138 = vector.shape_cast %80 : vector<8x128xf32> to vector<1x8x128xf32>
      tpu.vector_store %arg3[%c0_31, %135, %c0_32], %138 {strides = array<i32>} : memref<6x16x128xf32, #tpu.memory_space<vmem>>, vector<1x8x128xf32>,
      %c1_33 = arith.constant 1 : index
      %139 = arith.index_cast %2 : i32 to index
      %c0_34 = arith.constant 0 : index
      %140 = vector.load %arg3[%c1_33, %139, %c0_34] : memref<6x16x128xf32, #tpu.memory_space<vmem>>, vector<1x8x128xf32>
      %141 = vector.shape_cast %140 : vector<1x8x128xf32> to vector<8x128xf32>
      %142 = vector.shape_cast %84 : vector<8x128xf32> to vector<1x8x128xf32>
      tpu.vector_store %arg3[%c1_33, %139, %c0_34], %142 {strides = array<i32>} : memref<6x16x128xf32, #tpu.memory_space<vmem>>, vector<1x8x128xf32>,
      %c2_35 = arith.constant 2 : index
      %143 = arith.index_cast %2 : i32 to index
      %c0_36 = arith.constant 0 : index
      %144 = vector.load %arg3[%c2_35, %143, %c0_36] : memref<6x16x128xf32, #tpu.memory_space<vmem>>, vector<1x8x128xf32>
      %145 = vector.shape_cast %144 : vector<1x8x128xf32> to vector<8x128xf32>
      %146 = vector.shape_cast %95 : vector<8x128xf32> to vector<1x8x128xf32>
      tpu.vector_store %arg3[%c2_35, %143, %c0_36], %146 {strides = array<i32>} : memref<6x16x128xf32, #tpu.memory_space<vmem>>, vector<1x8x128xf32>,
      %c3_37 = arith.constant 3 : index
      %147 = arith.index_cast %2 : i32 to index
      %c0_38 = arith.constant 0 : index
      %148 = vector.load %arg3[%c3_37, %147, %c0_38] : memref<6x16x128xf32, #tpu.memory_space<vmem>>, vector<1x8x128xf32>
      %149 = vector.shape_cast %148 : vector<1x8x128xf32> to vector<8x128xf32>
      %150 = vector.shape_cast %127 : vector<8x128xf32> to vector<1x8x128xf32>
      tpu.vector_store %arg3[%c3_37, %147, %c0_38], %150 {strides = array<i32>} : memref<6x16x128xf32, #tpu.memory_space<vmem>>, vector<1x8x128xf32>,
      %c4_39 = arith.constant 4 : index
      %151 = arith.index_cast %2 : i32 to index
      %c0_40 = arith.constant 0 : index
      %152 = vector.load %arg3[%c4_39, %151, %c0_40] : memref<6x16x128xf32, #tpu.memory_space<vmem>>, vector<1x8x128xf32>
      %153 = vector.shape_cast %152 : vector<1x8x128xf32> to vector<8x128xf32>
      %154 = vector.shape_cast %134 : vector<8x128xf32> to vector<1x8x128xf32>
      tpu.vector_store %arg3[%c4_39, %151, %c0_40], %154 {strides = array<i32>} : memref<6x16x128xf32, #tpu.memory_space<vmem>>, vector<1x8x128xf32>,
      %c5_41 = arith.constant 5 : index
      %155 = arith.index_cast %2 : i32 to index
      %c0_42 = arith.constant 0 : index
      %156 = vector.load %arg3[%c5_41, %155, %c0_42] : memref<6x16x128xf32, #tpu.memory_space<vmem>>, vector<1x8x128xf32>
      %157 = vector.shape_cast %156 : vector<1x8x128xf32> to vector<8x128xf32>
      %158 = vector.shape_cast %122 : vector<8x128xf32> to vector<1x8x128xf32>
      tpu.vector_store %arg3[%c5_41, %155, %c0_42], %158 {strides = array<i32>} : memref<6x16x128xf32, #tpu.memory_space<vmem>>, vector<1x8x128xf32>,
    }
    %c2_i32_0 = arith.constant 2 : i32
    return
  }
  func.func @transform_0(%arg0: i32) -> (i32, i32, i32) {
    %c0_i32 = arith.constant 0 : i32
    %c0_i32_0 = arith.constant 0 : i32
    %c0_i32_1 = arith.constant 0 : i32
    return %c0_i32, %arg0, %c0_i32_0 : i32, i32, i32
  }
  func.func @transform_1(%arg0: i32) -> (i32, i32, i32) {
    %c0_i32 = arith.constant 0 : i32
    %c0_i32_0 = arith.constant 0 : i32
    %c0_i32_1 = arith.constant 0 : i32
    return %c0_i32, %arg0, %c0_i32_0 : i32, i32, i32
  }
  func.func @transform_2(%arg0: i32) -> (i32, i32, i32) {
    %c0_i32 = arith.constant 0 : i32
    %c0_i32_0 = arith.constant 0 : i32
    %c0_i32_1 = arith.constant 0 : i32
    return %c0_i32, %arg0, %c0_i32_0 : i32, i32, i32
  }
}

</mosaic_0001>

<bundles_post_ra>
// kernel: _lambda_.3
= control target key start
LH: loop header
LB: loop body
LE: loop exit
PB: predicated region body
PF: predicated region fallthrough
CT: control target
= control target key end

     0   :  { %s887_s9 = smov 0   ;;  %s1131_s0 = inlined_call_operand.vmem [shape: f32[6,16,128], index: 0, kind: input, shape index: {}]   ;;  %s1132_s1 = inlined_call_operand.vmem [shape: f32[3,16,128], index: 1, kind: input, shape index: {}]   ;;  %s1133_s2 = inlined_call_operand.vmem [shape: f32[6,16,128], index: 2, kind: output, shape index: {}]  }
   0x1 LB: > { %s893_s10 = sshll.u32 %s863_s9, 3  ;;  %v865_v22 = vmov 683565275   ;;  %v866_v24 = vmov 2475754826   ;;  %s16_s9 = sadd.s32 1, %s863_s9   ;;  %s863_s9 = sphi %s887_s9, %s16_s9  }
   0x2   : > { %s899_s13 = scalar_lea.vmem %s1131_s0, %s893_s10  ;;  %v867_v26 = vmov 2131351028   ;;  %v868_v28 = vmov 2102212464   ;;  %v869_v30 = vmov 920167782   ;;  %s35_s16 = scalar_lea.vmem %s1132_s1, %s893_s10 }
   0x3   : > { %v902_v0 = vld [vmem:[%s899_s13 + $0x20] sm:$0xff]  ;;  %v905_v1 = vld [vmem:[%s899_s13 + $0x50] sm:$0xff]  ;;  %v870_v39 = vmov 1326507024   ;;  %s1092_s19 = scalar_lea.vmem %s1133_s2, %s893_s10  ;;  %p13_p0 = scmp.ge.s32.totalorder %s16_s9, 2  }
   0x4   : > { %v41_v2 = vand.u32 2147483647, %v902_v0  ;;  %v44_v3 = vand.u32 2139095040, %v902_v0  ;;  %v910_v4 = vmul.f32 0.1, %v905_v1 }
   0x6   : > { %v48_v5 = vand.u32 8388607, %v41_v2  ;;  %v45_v6 = vshrl.u32 %v44_v3, 23  ;;  %v915_v7 = vmul.f32 0.5, %v910_v4 }
   0x8   : > { %v817_v8 = vadd.s32 4294967169, %v45_v6  ;;  %v357_v9 = vand.u32 2139095040, %v915_v7  ;;  %v49_v10 = vor.u32 8388608, %v48_v5  ;;  %v354_v13 = vand.u32 2147483647, %v915_v7 }
   0xa   : > { %v51_v11 = vadd.s32 1, %v817_v8  ;;  %v358_v12 = vshrl.u32 %v357_v9, 23  ;;  %v919_v16 = vshll.u32 %v49_v10, 8  ;;  %v361_v19 = vand.u32 8388607, %v354_v13 }
   0xc   : > { %vm52_vm0 = vcmp.gt.s32.totalorder %v51_v11, 0  ;;  %v823_v14 = vadd.s32 4294967169, %v358_v12  ;;  %v90_v32 = vand.u32 65535, %v919_v16  ;;  %v91_v33 = vshrl.u32 %v919_v16, 16 }
   0xd   : > { %v53_v15 = vsel %vm52_vm0, %v51_v11, 0  ;;  %v362_v53 = vor.u32 8388608, %v361_v19 }
   0xe   : > { %v54_v17 = vshrl.u32 %v53_v15, 5  ;;  %v55_v18 = vand.u32 31, %v53_v15  ;;  %v364_v20 = vadd.s32 1, %v823_v14 }
   0xf   : > { %v949_v9 = vshll.u32 %v362_v53, 8 }
  0x10   : > { %v56_v21 = vsub.s32 32, %v55_v18  ;;  %v58_v23 = vshll.u32 %v865_v22, %v55_v18  ;;  %v61_v25 = vshll.u32 %v866_v24, %v55_v18  ;;  %v64_v27 = vshll.u32 %v867_v26, %v55_v18 }
  0x11   : > { %v67_v29 = vshll.u32 %v868_v28, %v55_v18  ;;  %v70_v31 = vshll.u32 %v869_v30, %v55_v18  ;;  %vm73_vm1 = vcmp.lt.s32.totalorder %v54_v17, 1  ;;  %vm76_vm2 = vcmp.lt.s32.totalorder %v54_v17, 4 }
  0x12   : > { %v59_v34 = vshrl.u32 %v866_v24, %v56_v21  ;;  %v62_v35 = vshrl.u32 %v867_v26, %v56_v21  ;;  %v65_v36 = vshrl.u32 %v868_v28, %v56_v21  ;;  %v57_v37 = vshrl.u32 %v865_v22, %v56_v21 }
  0x13   : > { %v68_v38 = vshrl.u32 %v869_v30, %v56_v21  ;;  %v71_v40 = vshrl.u32 %v870_v39, %v56_v21  ;;  %vm365_vm3 = vcmp.gt.s32.totalorder %v364_v20, 0  ;;  %vm75_vm4 = vcmp.lt.s32.totalorder %v54_v17, 3 }
  0x14   : > { %v60_v41 = vor.u32 %v59_v34, %v58_v23  ;;  %v63_v42 = vor.u32 %v62_v35, %v61_v25  ;;  %v66_v43 = vor.u32 %v65_v36, %v64_v27  ;;  %v366_v46 = vsel %vm365_vm3, %v364_v20, 0 }
  0x15   : > { %v69_v44 = vor.u32 %v68_v38, %v67_v29  ;;  %v72_v45 = vor.u32 %v71_v40, %v70_v31  ;;  %vm74_vm5 = vcmp.lt.s32.totalorder %v54_v17, 2  ;;  %v368_v57 = vand.u32 31, %v366_v46 }
  0x16   : > { %v78_v47 = vsel %vm76_vm2, %v66_v43, 2102212464  ;;  %v81_v48 = vsel %vm73_vm1, %v60_v41, %v63_v42  ;;  %v85_v49 = vsel %vm73_vm1, %v63_v42, %v66_v43  ;;  %v77_v50 = vsel %vm73_vm1, %v57_v37, %v60_v41 }
  0x17   : > { %v82_v51 = vsel %vm76_vm2, %v69_v44, 920167782  ;;  %v86_v52 = vsel %vm76_vm2, %v72_v45, 1326507024  ;;  %v79_v54 = vsel %vm75_vm4, %v63_v42, %v78_v47  ;;  %v941_v60 = vshrl.u32 %v366_v46, 5 }
  0x18   : > { %v83_v55 = vsel %vm75_vm4, %v66_v43, %v82_v51  ;;  %v87_v56 = vsel %vm75_vm4, %v69_v44, %v86_v52  ;;  %v944_v5 = vsel %vm74_vm5, %v77_v50, %v79_v54  ;;  %v946_v6 = vsub.s32 32, %v368_v57 }
  0x19   : > { %v84_v58 = vsel %vm74_vm5, %v81_v48, %v83_v55  ;;  %v88_v59 = vsel %vm74_vm5, %v85_v49, %v87_v56  ;;  %v371_v8 = vshll.u32 %v865_v22, %v368_v57  ;;  %v374_v14 = vshll.u32 %v866_v24, %v368_v57 }
  0x1a   : > { %v92_v61 = vand.u32 65535, %v88_v59  ;;  %v93_v62 = vshrl.u32 %v88_v59, 16  ;;  %v114_v63 = vand.u32 65535, %v84_v58  ;;  %v115_v3 = vshrl.u32 %v84_v58, 16 }
  0x1b   : > { %v377_v20 = vshll.u32 %v867_v26, %v368_v57  ;;  %vm386_vm6 = vcmp.lt.s32.totalorder %v941_v60, 1  ;;  %v372_v37 = vshrl.u32 %v866_v24, %v946_v6  ;;  %v378_v49 = vshrl.u32 %v868_v28, %v946_v6 }
  0x1c   : > { %v94_v10 = vmul.u32 %v92_v61, %v90_v32  ;;  %v95_v11 = vmul.u32 %v93_v62, %v90_v32  ;;  %v96_v12 = vmul.u32 %v92_v61, %v91_v33  ;;  %v116_v15 = vmul.u32 %v114_v63, %v90_v32 }
  0x1d   : > { %v117_v18 = vmul.u32 %v115_v3, %v90_v32  ;;  %v118_v19 = vmul.u32 %v114_v63, %v91_v33  ;;  %v97_v21 = vmul.u32 %v93_v62, %v91_v33  ;;  %v119_v25 = vmul.u32 %v115_v3, %v91_v33 }
  0x1e   : > { %v98_v17 = vshll.u32 %v95_v11, 16  ;;  %v100_v23 = vshll.u32 %v96_v12, 16  ;;  %v99_v27 = vshrl.u32 %v95_v11, 16  ;;  %v101_v29 = vshrl.u32 %v96_v12, 16 }
  0x1f   : > { %v120_v31 = vshll.u32 %v117_v18, 16  ;;  %v122_v34 = vshll.u32 %v118_v19, 16  ;;  %v121_v36 = vshrl.u32 %v117_v18, 16  ;;  %v871_v32 = vmov 0  }
  0x20   : > { %vm102_vm7 = vc.u32 %v94_v10, %v98_v17  ;;  %v104_v35 = vadd.s32 %v98_v17, %v94_v10  ;;  %v375_v33 = vshrl.u32 %v867_v26, %v946_v6  ;;  %v123_v42 = vshrl.u32 %v118_v19, 16 }
  0x21   : > { %v103_v38 = vsel %vm102_vm7, 1, %v871_v32  ;;  %vm124_vm8 = vc.u32 %v116_v15, %v120_v31  ;;  %v126_v40 = vadd.s32 %v120_v31, %v116_v15  ;;  %v961_v46 = vor.u32 %v372_v37, %v371_v8 }
  0x22   : > { %v105_v41 = vadd.s32 %v103_v38, %v97_v21  ;;  %vm106_vm9 = vc.u32 %v104_v35, %v100_v23  ;;  %v125_v43 = vsel %vm124_vm8, 1, %v871_v32  ;;  %v964_v48 = vor.u32 %v375_v33, %v374_v14 }
  0x23   : > { %v107_v44 = vsel %vm106_vm9, 1, %v871_v32  ;;  %v127_v45 = vadd.s32 %v125_v43, %v119_v25  ;;  %vm128_vm10 = vc.u32 %v126_v40, %v122_v34  ;;  %v380_v50 = vshll.u32 %v868_v28, %v368_v57 }
  0x24   : > { %v109_v24 = vadd.s32 %v107_v44, %v105_v41  ;;  %v129_v47 = vsel %vm128_vm10, 1, %v871_v32  ;;  %v381_v51 = vshrl.u32 %v869_v30, %v946_v6  ;;  %v383_v52 = vshll.u32 %v869_v30, %v368_v57 }
  0x25   : > { %v131_v26 = vadd.s32 %v129_v47, %v127_v45  ;;  %v972_v54 = vadd.s32 %v126_v40, %v122_v34  ;;  %v379_v55 = vor.u32 %v378_v49, %v377_v20  ;;  %v384_v56 = vshrl.u32 %v870_v39, %v946_v6 }
  0x26   : > { %v110_v53 = vadd.s32 %v109_v24, %v99_v27  ;;  %v382_v59 = vor.u32 %v381_v51, %v380_v50  ;;  %vm388_vm11 = vcmp.lt.s32.totalorder %v941_v60, 3  ;;  %vm389_vm12 = vcmp.lt.s32.totalorder %v941_v60, 4 }
  0x27   : > { %v132_v58 = vadd.s32 %v131_v26, %v121_v36  ;;  %v385_v28 = vor.u32 %v384_v56, %v383_v52  ;;  %vm387_vm13 = vcmp.lt.s32.totalorder %v941_v60, 2  ;;  %v394_v30 = vsel %vm386_vm6, %v961_v46, %v964_v48 }
  0x28   : > { %v978_v61 = vadd.s32 %v110_v53, %v101_v29  ;;  %v395_v39 = vsel %vm389_vm12, %v382_v59, 920167782  ;;  %v134_v57 = vmul.u32 %v919_v16, %v944_v5  ;;  %v403_v3 = vand.u32 65535, %v949_v9 }
  0x29   : > { %v133_v62 = vadd.s32 %v132_v58, %v123_v42  ;;  %v396_v63 = vsel %vm388_vm11, %v379_v55, %v395_v39  ;;  %v398_v11 = vsel %vm386_vm6, %v964_v48, %v379_v55  ;;  %v399_v12 = vsel %vm389_vm12, %v385_v28, 1326507024 }
  0x2a   : > { %vm136_vm14 = vc.u32 %v978_v61, %v972_v54  ;;  %v397_v10 = vsel %vm387_vm13, %v394_v30, %v396_v63  ;;  %v400_v16 = vsel %vm388_vm11, %v382_v59, %v399_v12  ;;  %v404_v5 = vshrl.u32 %v949_v9, 16 }
  0x2b   : > { %v137_v8 = vadd.s32 1, %v133_v62  ;;  %v427_v14 = vand.u32 65535, %v397_v10  ;;  %v428_v15 = vshrl.u32 %v397_v10, 16  ;;  %v401_v19 = vsel %vm387_vm13, %v398_v11, %v400_v16 }
  0x2c   : > { %v405_v21 = vand.u32 65535, %v401_v19  ;;  %v406_v17 = vshrl.u32 %v401_v19, 16  ;;  %v370_v33 = vshrl.u32 %v865_v22, %v946_v6  ;;  %v391_v41 = vsel %vm389_vm12, %v379_v55, 2102212464 }
  0x2d   : > { %v138_v18 = vsel %vm136_vm14, %v137_v8, %v133_v62  ;;  %v430_v23 = vmul.u32 %v428_v15, %v403_v3  ;;  %v431_v25 = vmul.u32 %v427_v14, %v404_v5  ;;  %v429_v35 = vmul.u32 %v427_v14, %v403_v3 }
  0x2e   : > { %v139_v20 = vadd.s32 %v138_v18, %v134_v57  ;;  %v407_v29 = vmul.u32 %v405_v21, %v403_v3  ;;  %v408_v31 = vmul.u32 %v406_v17, %v403_v3  ;;  %v409_v34 = vmul.u32 %v405_v21, %v404_v5 }
  0x2f   : > { %v433_v36 = vshll.u32 %v430_v23, 16  ;;  %v410_v38 = vmul.u32 %v406_v17, %v404_v5  ;;  %v435_v43 = vshll.u32 %v431_v25, 16  ;;  %v432_v24 = vmul.u32 %v428_v15, %v404_v5 }
  0x30   : > { %v140_v27 = vadd.s32 536870912, %v139_v20  ;;  %v411_v40 = vshll.u32 %v408_v31, 16  ;;  %v413_v42 = vshll.u32 %v409_v34, 16  ;;  %v412_v47 = vshrl.u32 %v408_v31, 16 }
  0x31   : > { %vm437_vm0 = vc.u32 %v429_v35, %v433_v36  ;;  %v439_v26 = vadd.s32 %v433_v36, %v429_v35  ;;  %v434_v52 = vshrl.u32 %v430_v23, 16  ;;  %v414_v22 = vshrl.u32 %v409_v34, 16 }
  0x32   : > { %v1006_v37 = vshrl.u32 %v140_v27, 30  ;;  %vm415_vm15 = vc.u32 %v407_v29, %v411_v40  ;;  %v417_v45 = vadd.s32 %v411_v40, %v407_v29  ;;  %v438_v53 = vsel %vm437_vm0, 1, %v871_v32 }
  0x33   : > { %v416_v49 = vsel %vm415_vm15, 1, %v871_v32  ;;  %vm441_vm2 = vc.u32 %v439_v26, %v435_v43  ;;  %v440_v58 = vadd.s32 %v438_v53, %v432_v24  ;;  %v390_v59 = vsel %vm386_vm6, %v370_v33, %v961_v46 }
  0x34   : > { %v142_v44 = vshll.u32 %v1006_v37, 30  ;;  %v418_v51 = vadd.s32 %v416_v49, %v410_v38  ;;  %vm419_vm1 = vc.u32 %v417_v45, %v413_v42  ;;  %v392_v28 = vsel %vm388_vm11, %v964_v48, %v391_v41 }
  0x35   : > { %v420_v6 = vsel %vm419_vm1, 1, %v871_v32  ;;  %v442_v62 = vsel %vm441_vm2, 1, %v871_v32  ;;  %v436_v57 = vshrl.u32 %v431_v25, 16  ;;  %v443_v8 = vadd.s32 %v439_v26, %v435_v43 }
  0x36   : > { %v143_v50 = vsub.s32 %v139_v20, %v142_v44  ;;  %v422_v56 = vadd.s32 %v420_v6, %v418_v51  ;;  %v444_v63 = vadd.s32 %v442_v62, %v440_v58  ;;  %v393_v10 = vsel %vm387_vm13, %v390_v59, %v392_v28 }
  0x37   : > { %v135_v46 = vadd.s32 %v972_v54, %v978_v61  ;;  %v447_v48 = vmul.u32 %v949_v9, %v393_v10  ;;  %vm43_vm6 = vcmp.lt.s32.totalorder %v902_v0, 0  ;;  %vm42_vm7 = vcmp.le.f32.partialorder %v41_v2, 0.7853982 }
  0x38   : > { %vm144_vm3 = vcmp.lt.s32.totalorder %v143_v50, 0  ;;  %v145_v55 = vsub.s32 0, %v143_v50  ;;  %v423_v39 = vadd.s32 %v422_v56, %v412_v47  ;;  %v445_v12 = vadd.s32 %v444_v63, %v434_v52 }
  0x39   : > { %v165_v38 = vsub.s32 4, %v1006_v37  ;;  %vm356_vm0 = vcmp.lt.s32.totalorder %v915_v7, 0  ;;  %vm355_vm1 = vcmp.le.f32.partialorder %v354_v13, 0.7853982 }
  0x3a   : > { %v146_v30 = vsel %vm144_vm3, %v145_v55, %v143_v50  ;;  %v424_v11 = vadd.s32 %v423_v39, %v414_v22  ;;  %v446_v5 = vadd.s32 %v445_v12, %v436_v57  ;;  %vm184_vm3 = vweird.f32 %v902_v0 }
  0x3b   : > { %v147_v3 = vclz %v146_v30  ;;  %v166_v43 = vsel %vm43_vm6, %v165_v38, %v1006_v37 }
  0x3c   : > { %vm449_vm5 = vc.u32 %v424_v11, %v443_v8  ;;  %v450_v14 = vadd.s32 1, %v446_v5  ;;  %v168_v26 = vsel %vm42_vm7, 0, %v166_v43  ;;  %v448_v2 = vadd.s32 %v443_v8, %v424_v11 }
  0x3d   : > { %v818_v16 = vadd.s32 4294967294, %v147_v3  ;;  %v339_v56 = vadd.s32 3, %v168_v26  ;;  %v185_v57 = vand.u32 3, %v168_v26 }
  0x3e   : > { %v451_v20 = vsel %vm449_vm5, %v450_v14, %v446_v5 }
  0x3f   : > { %vm819_vm4 = vcmp.lt.s32.totalorder %v818_v16, 0  ;;  %v452_v17 = vadd.s32 %v451_v20, %v447_v48  ;;  %v340_v3 = vand.u32 3, %v339_v56  ;;  %vm187_vm10 = vcmp.eq.s32.totalorder %v185_v57, 0 }
  0x40   : > { %v150_v32 = vsel %vm819_vm4, 0, %v818_v16  ;;  %vm190_vm11 = vcmp.eq.s32.totalorder %v185_v57, 2  ;;  %vm186_vm14 = vcmp.lt.s32.totalorder %v185_v57, 2 }
  0x41   : > { %v151_v15 = vsub.s32 32, %v150_v32  ;;  %v152_v18 = vshll.u32 %v143_v50, %v150_v32  ;;  %v155_v19 = vsub.s32 4294967266, %v150_v32  ;;  %v453_v27 = vadd.s32 536870912, %v452_v17 }
  0x42   : > { %vm342_vm12 = vcmp.eq.s32.totalorder %v340_v3, 0  ;;  %vm345_vm13 = vcmp.eq.s32.totalorder %v340_v3, 2  ;;  %vm341_vm15 = vcmp.lt.s32.totalorder %v340_v3, 2 }
  0x43   : > { %v153_v21 = vshrl.u32 %v135_v46, %v151_v15  ;;  %v156_v60 = vadd.s32 127, %v155_v19  ;;  %v1028_v34 = vshrl.u32 %v453_v27, 30  ;;  %v667_v15 = vand.u32 2147483647, %v910_v4 }
  0x45   : > { %v154_v23 = vor.u32 %v153_v21, %v152_v18  ;;  %v157_v25 = vshll.u32 %v156_v60, 23  ;;  %v455_v9 = vshll.u32 %v1028_v34, 30  ;;  %v478_v14 = vsub.s32 4, %v1028_v34 }
  0x46   : > { %vm1043_vm2 = vcmp.lt.f32.partialorder %v667_v15, 1e-06 }
  0x47   : > { %v158_v29 = vor.u32 4788187, %v157_v25  ;;  %v161_v31 = vcvt.s32.f32 %v154_v23  ;;  %v456_v35 = vsub.s32 %v452_v17, %v455_v9  ;;  %v479_v23 = vsel %vm356_vm0, %v478_v14, %v1028_v34  ;;  %v1053_v34 = vld [vmem:[%s899_s13 + $0x30] sm:$0xff] }
  0x48   : > { %v481_v9 = vsel %vm355_vm1, 0, %v479_v23  ;;  %v669_v13 = vsel %vm1043_vm2, 1.0, %v910_v4 }
  0x49   : > { %v159_v54 = vand.u32 2147483647, %v158_v29  ;;  %vm457_vm8 = vcmp.lt.s32.totalorder %v456_v35, 0  ;;  %v458_v40 = vsub.s32 0, %v456_v35  ;;  %v498_v43 = vadd.s32 3, %v481_v9 }
  0x4a   : > { %855 = vrcp.f32 %v669_v13 }
  0x4b   : > { %v162_v61 = vmul.f32 %v161_v31, %v159_v54  ;;  %v459_v42 = vsel %vm457_vm8, %v458_v40, %v456_v35 }
  0x4c   : > { %v460_v45 = vclz %v459_v42 }
  0x4d   : > { %v163_v36 = vxor.u32 2147483648, %v162_v61 }
  0x4e   : > { %v824_v49 = vadd.s32 4294967294, %v460_v45 }
  0x4f   : > { %v164_v33 = vsel %vm43_vm6, %v163_v36, %v162_v61 }
  0x50   : > { %v167_v41 = vsel %vm42_vm7, %v902_v0, %v164_v33  ;;  %vm825_vm9 = vcmp.lt.s32.totalorder %v824_v49, 0 }
  0x51   : > { %v169_v44 = vmul.f32 %v167_v41, %v167_v41  ;;  %v463_v52 = vsel %vm825_vm9, 0, %v824_v49 }
  0x52   : > { %v464_v53 = vsub.s32 32, %v463_v52  ;;  %v465_v55 = vshll.u32 %v456_v35, %v463_v52  ;;  %v468_v58 = vsub.s32 4294967266, %v463_v52  ;;  %v1056_v35 = vld [vmem:[%s899_s13 + $0x40] sm:$0xff] }
  0x53   : > { %v170_v24 = vmul.f32 -0.001358992, %v169_v44  ;;  %v177_v47 = vmul.f32 -0.00019511016, %v169_v44 }
  0x54   : > { %v466_v37 = vshrl.u32 %v448_v2, %v464_v53  ;;  %v469_v62 = vadd.s32 127, %v468_v58  ;;  %v814_v53 = vld [vmem:[%s35_s16 + $0x10] sm:$0xff] }
  0x55   : > { %v171_v50 = vadd.f32 0.041655596, %v170_v24  ;;  %v178_v51 = vadd.f32 0.008332121, %v177_v47  ;;  %v1075_v24 = vld [vmem:[%s899_s13] sm:$0xff]  ;;  %v1078_v47 = vld [vmem:[%s899_s13 + $0x10] sm:$0xff] }
  0x56   : > { %v467_v63 = vor.u32 %v466_v37, %v465_v55  ;;  %v470_v10 = vshll.u32 %v469_v62, 23  ;;  %v718_v2 = vmul.f32 %v905_v1, %v1078_v47  ;;  %v816_v62 = vld [vmem:[%s35_s16 + $0x20] sm:$0xff] }
  0x57   : > { %v172_v22 = vmul.f32 %v171_v50, %v169_v44  ;;  %v179_v6 = vmul.f32 %v178_v51, %v169_v44  ;;  %v695_v50 = vadd.f32 %v902_v0, %v910_v4 }
  0x58   : > { %v471_v11 = vor.u32 4788187, %v470_v10  ;;  %v474_v16 = vcvt.s32.f32 %v467_v63  ;;  %v856_v63 = vpop.eup %855 }
  0x59   : > { %v173_v59 = vadd.f32 -0.4999988, %v172_v22  ;;  %v180_v28 = vadd.f32 -0.16666654, %v179_v6  ;;  %v724_v22 = vmul.f32 %v905_v1, %v1075_v24  ;;  %v36_v6 = vld [vmem:[%s35_s16] sm:$0xff] }
  0x5a   : > { %v472_v48 = vand.u32 2147483647, %v471_v11  ;;  %vm696_vm4 = vcmp.gt.f32.partialorder %v695_v50, 3.1415927  ;;  %v829_v58 = vadd.f32 -6.2831855, %v695_v50 }
  0x5b   : > { %v174_v30 = vmul.f32 %v173_v59, %v169_v44  ;;  %v181_v39 = vmul.f32 %v180_v28, %v169_v44  ;;  %v499_v59 = vand.u32 3, %v498_v43 }
  0x5c   : > { %v475_v18 = vmul.f32 %v474_v16, %v472_v48  ;;  %v698_v57 = vsel %vm696_vm4, %v829_v58, %v695_v50 }
  0x5d   : > { %v175_v12 = vadd.f32 1.0, %v174_v30  ;;  %v182_v8 = vadd.f32 1.0, %v181_v39  ;;  %v653_v39 = vand.u32 3, %v481_v9  ;;  %vm699_vm5 = vcmp.le.f32.partialorder %v698_v57, -3.1415927 }
  0x5e   : > { %v476_v17 = vxor.u32 2147483648, %v475_v18  ;;  %v700_v3 = vadd.f32 6.2831855, %v698_v57  ;;  %vm504_vm6 = vcmp.eq.s32.totalorder %v499_v59, 2  ;;  %vm500_vm8 = vcmp.lt.s32.totalorder %v499_v59, 2 }
  0x5f   : > { %v183_v5 = vmul.f32 %v182_v8, %v167_v41  ;;  %v191_v46 = vxor.u32 2147483648, %v175_v12  ;;  %vm658_vm7 = vcmp.eq.s32.totalorder %v653_v39, 2  ;;  %vm501_vm9 = vcmp.eq.s32.totalorder %v499_v59, 0 }
  0x60   : > { %v477_v31 = vsel %vm356_vm0, %v476_v17, %v475_v18  ;;  %v701_v16 = vsel %vm699_vm5, %v700_v3, %v698_v57  ;;  %v674_v18 = vmul.f32 %v910_v4, %v910_v4  ;;  %v350_v4 = vmul.f32 0.1, %v1053_v34 }
  0x61   : > { %v188_v32 = vxor.u32 2147483648, %v183_v5  ;;  %v192_v20 = vsel %vm190_vm11, %v191_v46, %v183_v5  ;;  %v347_v60 = vsel %vm345_vm13, %v191_v46, %v183_v5  ;;  %v480_v54 = vsel %vm355_vm1, %v915_v7, %v477_v31  ;;  %833 = vst [vmem:[%s1092_s19 + $0x20] sm:$0xff] %v701_v16 }
  0x62   : > { %v482_v61 = vmul.f32 %v480_v54, %v480_v54  ;;  %v1095_v5 = vadd.f32 %v816_v62, %v905_v1  ;;  %vm654_vm11 = vcmp.lt.s32.totalorder %v653_v39, 2 }
  0x63   : > { %v189_v19 = vsel %vm187_vm10, %v175_v12, %v188_v32  ;;  %v344_v21 = vsel %vm342_vm12, %v175_v12, %v188_v32  ;;  %v671_v32 = vmul.f32 %v856_v63, %v669_v13  ;;  %vm655_vm10 = vcmp.eq.s32.totalorder %v653_v39, 0 }
  0x64   : > { %v193_v27 = vsel %vm186_vm14, %v189_v19, %v192_v20  ;;  %v348_v29 = vsel %vm341_vm15, %v344_v21, %v347_v60  ;;  %v483_v40 = vmul.f32 -0.001358992, %v482_v61  ;;  %v490_v33 = vmul.f32 -0.00019511016, %v482_v61  ;;  %839 = vst [vmem:[%s1092_s19 + $0x50] sm:$0xff] %v1095_v5 }
  0x65   : > { %v1058_v36 = vsel %vm184_vm3, nan, %v193_v27  ;;  %v1060_v38 = vsel %vm184_vm3, nan, %v348_v29  ;;  %vm497_vm12 = vweird.f32 %v915_v7  ;;  %v672_v21 = vsub.f32 2.0, %v671_v32 }
  0x66   : > { %v715_v41 = vmul.f32 %v1053_v34, %v1058_v36  ;;  %v716_v42 = vmul.f32 %v1056_v35, %v1060_v38  ;;  %v721_v44 = vmul.f32 %v1053_v34, %v1060_v38  ;;  %v722_v45 = vmul.f32 %v1056_v35, %v1058_v36 }
  0x67   : > { %v484_v49 = vadd.f32 0.041655596, %v483_v40  ;;  %v491_v26 = vadd.f32 0.008332121, %v490_v33  ;;  %v675_v29 = vmul.f32 0.16666667, %v674_v18 }
  0x68   : > { %v717_v51 = vsub.f32 %v715_v41, %v716_v42  ;;  %v723_v52 = vadd.f32 %v722_v45, %v721_v44  ;;  %v351_v41 = vmul.f32 0.1, %v1056_v35 }
  0x69   : > { %v485_v55 = vmul.f32 %v484_v49, %v482_v61  ;;  %v492_v56 = vmul.f32 %v491_v26, %v482_v61  ;;  %v676_v33 = vsub.f32 1.0, %v675_v29 }
  0x6a   : > { %v719_v28 = vadd.f32 %v718_v2, %v717_v51  ;;  %v725_v37 = vsub.f32 %v723_v52, %v724_v22 }
  0x6b   : > { %v486_v0 = vadd.f32 -0.4999988, %v485_v55  ;;  %v493_v30 = vadd.f32 -0.16666654, %v492_v56 }
  0x6c   : > { %v1086_v10 = vadd.f32 %v719_v28, %v36_v6  ;;  %v726_v12 = vadd.f32 %v814_v53, %v725_v37 }
  0x6d   : > { %v487_v8 = vmul.f32 %v486_v0, %v482_v61  ;;  %v494_v11 = vmul.f32 %v493_v30, %v482_v61  ;;  %v673_v61 = vmul.f32 %v856_v63, %v672_v21 }
  0x6f   : > { %v488_v46 = vadd.f32 1.0, %v487_v8  ;;  %v495_v48 = vadd.f32 1.0, %v494_v11 }
  0x71   : > { %v496_v14 = vmul.f32 %v495_v48, %v480_v54  ;;  %v505_v15 = vxor.u32 2147483648, %v488_v46 }
  0x73   : > { %v502_v19 = vxor.u32 2147483648, %v496_v14  ;;  %v506_v20 = vsel %vm504_vm6, %v505_v15, %v496_v14  ;;  %v660_v1 = vsel %vm658_vm7, %v505_v15, %v496_v14 }
  0x75   : > { %v503_v60 = vsel %vm501_vm9, %v488_v46, %v502_v19  ;;  %v657_v17 = vsel %vm655_vm10, %v488_v46, %v502_v19 }
  0x76   : > { %v507_v23 = vsel %vm500_vm8, %v503_v60, %v506_v20  ;;  %v661_v27 = vsel %vm654_vm11, %v657_v17, %v660_v1 }
  0x77   : > { %v508_v31 = vsel %vm497_vm12, nan, %v507_v23  ;;  %v662_v54 = vsel %vm497_vm12, nan, %v661_v27 }
  0x78   : > { %v663_v9 = vmul.f32 2.0, %v508_v31 }
  0x7a   : > { %v664_v13 = vmul.f32 %v663_v9, %v662_v54  ;;  %v665_v40 = vmul.f32 %v663_v9, %v508_v31 }
  0x7c   : > { %v666_v42 = vsub.f32 1.0, %v665_v40  ;;  %v677_v43 = vmul.f32 %v673_v61, %v664_v13  ;;  %v679_v44 = vmul.f32 %v673_v61, %v665_v40  ;;  %v703_v45 = vmul.f32 %v664_v13, %v1060_v38 }
  0x7d   : > { %v706_v49 = vmul.f32 %v664_v13, %v1058_v36 }
  0x7e   : > { %v678_v26 = vsel %vm1043_vm2, %v676_v33, %v677_v43  ;;  %v680_v50 = vsel %vm1043_vm2, %v915_v7, %v679_v44  ;;  %v702_v51 = vmul.f32 %v666_v42, %v1058_v36  ;;  %v705_v34 = vmul.f32 %v666_v42, %v1060_v38 }
  0x7f   : > { %v681_v2 = vmul.f32 %v678_v26, %v350_v4  ;;  %v682_v35 = vmul.f32 %v680_v50, %v351_v41  ;;  %v684_v52 = vmul.f32 %v680_v50, %v350_v4  ;;  %v685_v22 = vmul.f32 %v678_v26, %v351_v41 }
  0x80   : > { %v704_v6 = vsub.f32 %v702_v51, %v703_v45  ;;  %v707_v53 = vadd.f32 %v706_v49, %v705_v34 }
  0x81   : > { %v683_v55 = vsub.f32 %v681_v2, %v682_v35  ;;  %v686_v56 = vadd.f32 %v685_v22, %v684_v52 }
  0x82   : > { %v728_v58 = vmul.f32 %v1086_v10, %v704_v6  ;;  %v729_v59 = vmul.f32 %v726_v12, %v707_v53  ;;  %v733_v28 = vsub.f32 0.0, %v707_v53  ;;  %v735_v37 = vmul.f32 %v726_v12, %v704_v6 }
  0x83   : > { %v687_v7 = vmul.f32 %v683_v55, %v1058_v36  ;;  %v689_v25 = vmul.f32 %v686_v56, %v1060_v38  ;;  %v691_v62 = vmul.f32 %v683_v55, %v1060_v38  ;;  %v693_v0 = vmul.f32 %v686_v56, %v1058_v36 }
  0x84   : > { %v730_v30 = vadd.f32 %v729_v59, %v728_v58  ;;  %v734_v39 = vmul.f32 %v733_v28, %v1086_v10 }
  0x85   : > { %v688_v57 = vadd.f32 %v687_v7, %v1075_v24  ;;  %v692_v63 = vadd.f32 %v1078_v47, %v691_v62 }
  0x86   : > { %v736_v3 = vadd.f32 %v735_v37, %v734_v39 }
  0x87   : > { %v690_v12 = vsub.f32 %v688_v57, %v689_v25  ;;  %v694_v8 = vadd.f32 %v693_v0, %v692_v63 }
  0x89   : > { %v708_v11 = vmul.f32 %v704_v6, %v690_v12  ;;  %v709_v16 = vmul.f32 %v707_v53, %v694_v8  ;;  %v712_v46 = vmul.f32 %v707_v53, %v690_v12  ;;  %v713_v48 = vmul.f32 %v704_v6, %v694_v8  ;;  %740 = vst [vmem:[%s1092_s19] sm:$0xff] %v690_v12 }
  0x8a   : > { %831 = vst [vmem:[%s1092_s19 + $0x10] sm:$0xff] %v694_v8 }
  0x8b   : > { %v710_v38 = vadd.f32 %v709_v16, %v708_v11  ;;  %v714_v36 = vsub.f32 %v712_v46, %v713_v48 }
  0x8d   : > { %v711_v32 = vsub.f32 0.0, %v710_v38  ;;  %v731_v10 = vmul.f32 %v1095_v5, %v714_v36 }
  0x8f   : > { %v732_v14 = vadd.f32 %v731_v10, %v730_v30  ;;  %v737_v24 = vmul.f32 %v1095_v5, %v711_v32  ;;  %15 = sbr.rel (!%p13_p0) target bundleno = 1 (0x1), region = 50 }
  0x91   : > { %v738_v47 = vsub.f32 %v736_v3, %v737_v24  ;;  %835 = vst [vmem:[%s1092_s19 + $0x30] sm:$0xff] %v732_v14 }
  0x93   : > { %837 = vst [vmem:[%s1092_s19 + $0x40] sm:$0xff] %v738_v47 }

// kernel: _lambda_.2
= control target key start
LH: loop header
LB: loop body
LE: loop exit
PB: predicated region body
PF: predicated region fallthrough
CT: control target
= control target key end

     0   :  { %vm110_vm0 = vcmask 1044480   ;;  %vm111_vm1 = vcmask 1045504   ;;  %v1407_v2 = vmov 65535   ;;  %vm106_vm2 = vcmask 89088   ;;  %s1860_s0 = inlined_call_operand.vmem [shape: bf16[11,2048], index: 0, kind: input, shape index: {}]   ;;  %s1861_s1 = inlined_call_operand.vmem [shape: bf16[5,11], index: 1, kind: input, shape index: {}]   ;;  %s1862_s5 = inlined_call_operand.vmem [shape: f32[5,2048], index: 5, kind: output, shape index: {1}]   ;;  %s1863_s2 = inlined_call_operand.vmem [shape: bf16[32,5], index: 2, kind: input, shape index: {}]   ;;  %s1864_s3 = inlined_call_operand.vmem [shape: bf16[3,32], index: 3, kind: input, shape index: {}]   ;;  %s1865_s4 = inlined_call_operand.vmem [shape: f32[3,2048], index: 4, kind: output, shape index: {0}]  }
   0x1   :  { %v1222_v0 = vld [vmem:[%s1860_s0] sm:$0xf]  ;;  %v112_v3 = vsel %vm110_vm0, 4294967295, %v1407_v2  ;;  %v1358_v6 = vld [vmem:[%s1860_s0 + $0x4] sm:$0xf]  ;;  %vm419_vm3 = vcmask 1041408  }
   0x2   :  { %v1366_v1 = vld [vmem:[%s1860_s0 + $0x3c] sm:$0x30]  ;;  %v1445_v5 = vsel %vm111_vm1, %v112_v3, 0  ;;  %v1224_v7 = vld [vmem:[%s1860_s0 + $0x40] sm:$0x30]  ;;  %vm420_vm4 = vcmask 1042432  }
   0x3   :  { %v1223_v4 = vor.u32 %v1366_v1, %v1222_v0  ;;  %v1227_v8 = vor.u32 %v1358_v6, %v1224_v7  ;;  %v1230_v9 = vld [vmem:[%s1860_s0 + $0x8] sm:$0xf]  ;;  %v1359_v13 = vld [vmem:[%s1860_s0 + $0xc] sm:$0xf]  ;;  %v1469_v15 = vld [vmem:[%s1861_s1] sm:$0x7] }
   0x4   :  { %v1367_v10 = vld [vmem:[%s1860_s0 + $0x44] sm:$0x30]  ;;  %v1232_v14 = vld [vmem:[%s1860_s0 + $0x48] sm:$0x30]  ;;  %v1246_v18 = vld [vmem:[%s1860_s0 + $0x18] sm:$0xf] }
   0x5   :  { %v115_v11 = vand.u32 %v1223_v4, %v1445_v5  ;;  %v1231_v12 = vor.u32 %v1367_v10, %v1230_v9  ;;  %v118_v16 = vand.u32 %v1227_v8, %v1445_v5  ;;  %v1235_v17 = vor.u32 %v1359_v13, %v1232_v14  ;;  %v1369_v19 = vld [vmem:[%s1860_s0 + $0x54] sm:$0x30]  ;;  %v1361_v20 = vld [vmem:[%s1860_s0 + $0x1c] sm:$0xf]  ;;  %v1238_v24 = vld [vmem:[%s1860_s0 + $0x10] sm:$0xf] }
   0x6   :  { %v1247_v22 = vor.u32 %v1369_v19, %v1246_v18  ;;  %v1248_v23 = vld [vmem:[%s1860_s0 + $0x58] sm:$0x30]  ;;  %v1368_v25 = vld [vmem:[%s1860_s0 + $0x4c] sm:$0x30]  ;;  %v1360_v29 = vld [vmem:[%s1860_s0 + $0x14] sm:$0xf] }
   0x7   :  { %169 = vmatpush.bf16.msra.mxu0 %v115_v11  ;;  %v121_v21 = vand.u32 %v1231_v12, %v1445_v5  ;;  %182 = vmatpush.bf16.msra.mxu1 %v118_v16  ;;  %v124_v26 = vand.u32 %v1235_v17, %v1445_v5  ;;  %v1251_v27 = vor.u32 %v1361_v20, %v1248_v23  ;;  %v1240_v30 = vld [vmem:[%s1860_s0 + $0x50] sm:$0x30]  ;;  %v1262_v31 = vld [vmem:[%s1860_s0 + $0x28] sm:$0xf]  ;;  %v1363_v35 = vld [vmem:[%s1860_s0 + $0x2c] sm:$0xf] }
   0x8   :  { %v1239_v28 = vor.u32 %v1368_v25, %v1238_v24  ;;  %v133_v32 = vand.u32 %v1247_v22, %v1445_v5  ;;  %v1243_v33 = vor.u32 %v1360_v29, %v1240_v30  ;;  %v1371_v34 = vld [vmem:[%s1860_s0 + $0x64] sm:$0x30]  ;;  %v1264_v36 = vld [vmem:[%s1860_s0 + $0x68] sm:$0x30]  ;;  %v1254_v44 = vld [vmem:[%s1860_s0 + $0x20] sm:$0xf] }
   0x9   :  { %195 = vmatpush.bf16.msra.mxu2 %v121_v21  ;;  %208 = vmatpush.bf16.msra.mxu3 %v124_v26  ;;  %v136_v37 = vand.u32 %v1251_v27, %v1445_v5  ;;  %v1263_v39 = vor.u32 %v1371_v34, %v1262_v31  ;;  %v1267_v41 = vor.u32 %v1363_v35, %v1264_v36  ;;  %v1370_v45 = vld [vmem:[%s1860_s0 + $0x5c] sm:$0x30]  ;;  %v1362_v46 = vld [vmem:[%s1860_s0 + $0x24] sm:$0xf]  ;;  %v1278_v52 = vld [vmem:[%s1860_s0 + $0x38] sm:$0xf] }
   0xa   :  { %1284 = vmatmul.msk.bf16.vlgmr.msra.gmra.mxu0 %vm106_vm2, %v1469_v15  ;;  %v127_v38 = vand.u32 %v1239_v28, %v1445_v5  ;;  %1285 = vmatmul.msk.bf16.vlgmr.msra.gmra.mxu1 %vm106_vm2, %v1469_v15  ;;  %v130_v40 = vand.u32 %v1243_v33, %v1445_v5  ;;  %v1255_v47 = vor.u32 %v1370_v45, %v1254_v44  ;;  %v1256_v48 = vld [vmem:[%s1860_s0 + $0x60] sm:$0x30]  ;;  %v1373_v53 = vld [vmem:[%s1860_s0 + $0x74] sm:$0x30]  ;;  %v1365_v54 = vld [vmem:[%s1860_s0 + $0x3c] sm:$0xf] }
   0xb   :  { %v145_v42 = vand.u32 %v1263_v39, %v1445_v5  ;;  %v148_v43 = vand.u32 %v1267_v41, %v1445_v5  ;;  %v1259_v49 = vor.u32 %v1362_v46, %v1256_v48  ;;  %v1280_v55 = vld [vmem:[%s1860_s0 + $0x78] sm:$0x30]  ;;  %v1279_v56 = vor.u32 %v1373_v53, %v1278_v52  ;;  %v1270_v60 = vld [vmem:[%s1860_s0 + $0x30] sm:$0xf]  ;;  %v1364_v62 = vld [vmem:[%s1860_s0 + $0x34] sm:$0xf] }
   0xc   :  { %1286 = vmatmul.msk.bf16.vlgmr.msra.gmra.mxu2 %vm106_vm2, %v1469_v15  ;;  %1287 = vmatmul.msk.bf16.vlgmr.msra.gmra.mxu3 %vm106_vm2, %v1469_v15  ;;  %v139_v50 = vand.u32 %v1255_v47, %v1445_v5  ;;  %v1283_v57 = vor.u32 %v1365_v54, %v1280_v55  ;;  %v1372_v61 = vld [vmem:[%s1860_s0 + $0x6c] sm:$0x30]  ;;  %v1272_v0 = vld [vmem:[%s1860_s0 + $0x70] sm:$0x30]  ;;  %v421_v7 = vsel %vm419_vm3, 4294967295, %v1407_v2  ;;  %v1604_v18 = vld [vmem:[%s1863_s2] sm:$0xff] }
   0xd   :  { %247 = vmatpush.bf16.msrb.mxu2 %v133_v32  ;;  %260 = vmatpush.bf16.msrb.mxu3 %v136_v37  ;;  %v142_v51 = vand.u32 %v1259_v49, %v1445_v5  ;;  %v157_v58 = vand.u32 %v1279_v56, %v1445_v5  ;;  %v1271_v63 = vor.u32 %v1372_v61, %v1270_v60  ;;  %v1591_v9 = vsel %vm420_vm4, %v421_v7, 0 }
   0xe   :  { %221 = vmatpush.bf16.msrb.mxu0 %v127_v38  ;;  %234 = vmatpush.bf16.msrb.mxu1 %v130_v40  ;;  %v160_v59 = vand.u32 %v1283_v57, %v1445_v5  ;;  %v1275_v1 = vor.u32 %v1364_v62, %v1272_v0  ;;  %vm412_vm5 = vcmask 39936   ;;  %v1632_v38 = vld [vmem:[%s1863_s2 + $0x8] sm:$0xff]  ;;  %vm935_vm6 = vcmask 261120  }
   0xf   :  { %v151_v3 = vand.u32 %v1271_v63, %v1445_v5  ;;  %vm1187_vm7 = vcmask 1043456  }
  0x10   :  { %v154_v4 = vand.u32 %v1275_v1, %v1445_v5 }
  0x11   :  { %299 = vmatpush.bf16.msra.mxu2 %v145_v42  ;;  %312 = vmatpush.bf16.msra.mxu3 %v148_v43 }
  0x12   :  { %273 = vmatpush.bf16.msra.mxu0 %v139_v50  ;;  %286 = vmatpush.bf16.msra.mxu1 %v142_v51 }
  0x1a   :  { %1288 = vmatmul.msk.bf16.vlgmr.msrb.gmra.mxu0 %vm106_vm2, %v1469_v15  ;;  %1289 = vmatmul.msk.bf16.vlgmr.msrb.gmra.mxu1 %vm106_vm2, %v1469_v15 }
  0x1b   :  { %325 = vmatpush.bf16.msrb.mxu0 %v151_v3  ;;  %338 = vmatpush.bf16.msrb.mxu1 %v154_v4 }
  0x1c   :  { %1290 = vmatmul.msk.bf16.vlgmr.msrb.gmra.mxu2 %vm106_vm2, %v1469_v15  ;;  %1291 = vmatmul.msk.bf16.vlgmr.msrb.gmra.mxu3 %vm106_vm2, %v1469_v15 }
  0x1d   :  { %351 = vmatpush.bf16.msrb.mxu2 %v157_v58  ;;  %364 = vmatpush.bf16.msrb.mxu3 %v160_v59 }
  0x2a   :  { %1292 = vmatmul.msk.bf16.vlgmr.msra.gmra.mxu0 %vm106_vm2, %v1469_v15  ;;  %1293 = vmatmul.msk.bf16.vlgmr.msra.gmra.mxu1 %vm106_vm2, %v1469_v15 }
  0x2c   :  { %1294 = vmatmul.msk.bf16.vlgmr.msra.gmra.mxu2 %vm106_vm2, %v1469_v15  ;;  %1295 = vmatmul.msk.bf16.vlgmr.msra.gmra.mxu3 %vm106_vm2, %v1469_v15 }
  0x3a   :  { %1296 = vmatmul.msk.bf16.vlgmr.msrb.gmra.mxu0 %vm106_vm2, %v1469_v15  ;;  %1297 = vmatmul.msk.bf16.vlgmr.msrb.gmra.mxu1 %vm106_vm2, %v1469_v15 }
  0x3c   :  { %1298 = vmatmul.msk.bf16.vlgmr.msrb.gmra.mxu2 %vm106_vm2, %v1469_v15  ;;  %1299 = vmatmul.msk.bf16.vlgmr.msrb.gmra.mxu3 %vm106_vm2, %v1469_v15 }
  0x87   :  { %v171_v5 = vpop.f32.mrf.mxu0  ;;  %v184_v6 = vpop.f32.mrf.mxu1 }
  0x88   :  { %1375 = vtanh.f32 %v171_v5 }
  0x89   :  { %1377 = vtanh.f32 %v184_v6 }
  0x8e   :  { %v1376_v8 = vpop.eup %1375 }
  0x8f   :  { %v1378_v10 = vpop.eup %1377  ;;  %v386_v11 = vpack.c.bf16 %v1376_v8, %v1376_v8  ;;  %1147 = vst [vmem:[%s1862_s5] sm:$0x1f] %v1376_v8  ;;  %v197_v12 = vpop.f32.mrf.mxu2 }
  0x90   :  { %v173_v13 = vpop.f32.mrf.mxu0  ;;  %v387_v14 = vpack.c.bf16 %v1378_v10, %v1378_v10  ;;  %1148 = vst [vmem:[%s1862_s5 + $0x8] sm:$0x1f] %v1378_v10  ;;  %1379 = vtanh.f32 %v197_v12  ;;  %v210_v15 = vpop.f32.mrf.mxu3 }
  0x91   :  { %v186_v16 = vpop.f32.mrf.mxu1  ;;  %1381 = vtanh.f32 %v210_v15  ;;  %v424_v2 = vand.u32 %v1591_v9, %v386_v11 }
  0x92   :  { %v427_v17 = vand.u32 %v1591_v9, %v387_v14 }
  0x93   :  { %478 = vmatpush.bf16.msra.mxu0 %v424_v2 }
  0x94   :  { %497 = vmatpush.bf16.msra.mxu1 %v427_v17 }
  0x96   :  { %v1380_v19 = vpop.eup %1379  ;;  %1308 = vmatmul.msk.bf16.vlgmr.msra.gmra.mxu0 %vm412_vm5, %v1604_v18 }
  0x97   :  { %v1382_v20 = vpop.eup %1381  ;;  %v388_v21 = vpack.c.bf16 %v1380_v19, %v1380_v19  ;;  %1149 = vst [vmem:[%s1862_s5 + $0x10] sm:$0x1f] %v1380_v19  ;;  %v199_v22 = vpop.f32.mrf.mxu2  ;;  %1310 = vmatmul.msk.bf16.vlgmr.msra.gmra.mxu1 %vm412_vm5, %v1604_v18 }
  0x98   :  { %v223_v23 = vpop.f32.mrf.mxu0  ;;  %v389_v24 = vpack.c.bf16 %v1382_v20, %v1382_v20  ;;  %1150 = vst [vmem:[%s1862_s5 + $0x18] sm:$0x1f] %v1382_v20  ;;  %v212_v25 = vpop.f32.mrf.mxu3 }
  0x99   :  { %1383 = vtanh.f32 %v223_v23  ;;  %v236_v26 = vpop.f32.mrf.mxu1  ;;  %v430_v27 = vand.u32 %v1591_v9, %v388_v21 }
  0x9a   :  { %1385 = vtanh.f32 %v236_v26  ;;  %v433_v28 = vand.u32 %v1591_v9, %v389_v24 }
  0x9b   :  { %516 = vmatpush.bf16.msra.mxu2 %v430_v27 }
  0x9c   :  { %535 = vmatpush.bf16.msra.mxu3 %v433_v28 }
  0x9e   :  { %1312 = vmatmul.msk.bf16.vlgmr.msra.gmra.mxu2 %vm412_vm5, %v1604_v18 }
  0x9f   :  { %v1384_v29 = vpop.eup %1383  ;;  %1314 = vmatmul.msk.bf16.vlgmr.msra.gmra.mxu3 %vm412_vm5, %v1604_v18  ;;  %v249_v31 = vpop.f32.mrf.mxu2 }
  0xa0   :  { %v1386_v30 = vpop.eup %1385  ;;  %v390_v32 = vpack.c.bf16 %v1384_v29, %v1384_v29  ;;  %1151 = vst [vmem:[%s1862_s5 + $0x20] sm:$0x1f] %v1384_v29  ;;  %v225_v33 = vpop.f32.mrf.mxu0  ;;  %1387 = vtanh.f32 %v249_v31 }
  0xa1   :  { %v262_v34 = vpop.f32.mrf.mxu3  ;;  %v391_v35 = vpack.c.bf16 %v1386_v30, %v1386_v30  ;;  %1152 = vst [vmem:[%s1862_s5 + $0x28] sm:$0x1f] %v1386_v30  ;;  %v238_v36 = vpop.f32.mrf.mxu1 }
  0xa2   :  { %1389 = vtanh.f32 %v262_v34  ;;  %v436_v37 = vand.u32 %v1591_v9, %v390_v32 }
  0xa3   :  { %v439_v39 = vand.u32 %v1591_v9, %v391_v35 }
  0xa4   :  { %554 = vmatpush.bf16.msrb.mxu0 %v436_v37 }
  0xa5   :  { %573 = vmatpush.bf16.msrb.mxu1 %v439_v39 }
  0xa6   :  { %v1388_v40 = vpop.eup %1387  ;;  %1309 = vmatmul.msk.bf16.gmra.mxu0 %vm412_vm5, %v1632_v38 }
  0xa7   :  { %v392_v42 = vpack.c.bf16 %v1388_v40, %v1388_v40  ;;  %1153 = vst [vmem:[%s1862_s5 + $0x30] sm:$0x1f] %v1388_v40  ;;  %v251_v43 = vpop.f32.mrf.mxu2  ;;  %1311 = vmatmul.msk.bf16.gmra.mxu1 %vm412_vm5, %v1632_v38 }
  0xa8   :  { %v1390_v41 = vpop.eup %1389  ;;  %v275_v44 = vpop.f32.mrf.mxu0 }
  0xa9   :  { %v393_v45 = vpack.c.bf16 %v1390_v41, %v1390_v41  ;;  %1154 = vst [vmem:[%s1862_s5 + $0x38] sm:$0x1f] %v1390_v41  ;;  %v264_v46 = vpop.f32.mrf.mxu3  ;;  %1391 = vtanh.f32 %v275_v44  ;;  %v288_v47 = vpop.f32.mrf.mxu1  ;;  %v442_v48 = vand.u32 %v1591_v9, %v392_v42 }
  0xaa   :  { %1393 = vtanh.f32 %v288_v47 }
  0xab   :  { %v445_v49 = vand.u32 %v1591_v9, %v393_v45  ;;  %592 = vmatpush.bf16.msrb.mxu2 %v442_v48 }
  0xad   :  { %611 = vmatpush.bf16.msrb.mxu3 %v445_v49 }
  0xae   :  { %1313 = vmatmul.msk.bf16.gmra.mxu2 %vm412_vm5, %v1632_v38 }
  0xaf   :  { %v1392_v50 = vpop.eup %1391  ;;  %1315 = vmatmul.msk.bf16.gmra.mxu3 %vm412_vm5, %v1632_v38  ;;  %v301_v52 = vpop.f32.mrf.mxu2 }
  0xb0   :  { %v1394_v51 = vpop.eup %1393  ;;  %v394_v53 = vpack.c.bf16 %v1392_v50, %v1392_v50  ;;  %1155 = vst [vmem:[%s1862_s5 + $0x40] sm:$0x1f] %v1392_v50  ;;  %v277_v54 = vpop.f32.mrf.mxu0  ;;  %1395 = vtanh.f32 %v301_v52 }
  0xb1   :  { %v314_v55 = vpop.f32.mrf.mxu3  ;;  %v395_v56 = vpack.c.bf16 %v1394_v51, %v1394_v51  ;;  %1156 = vst [vmem:[%s1862_s5 + $0x48] sm:$0x1f] %v1394_v51  ;;  %v290_v57 = vpop.f32.mrf.mxu1 }
  0xb2   :  { %1397 = vtanh.f32 %v314_v55  ;;  %v448_v58 = vand.u32 %v1591_v9, %v394_v53 }
  0xb3   :  { %v451_v59 = vand.u32 %v1591_v9, %v395_v56 }
  0xb4   :  { %630 = vmatpush.bf16.msra.mxu0 %v448_v58 }
  0xb5   :  { %649 = vmatpush.bf16.msra.mxu1 %v451_v59 }
  0xb6   :  { %v1396_v60 = vpop.eup %1395  ;;  %1316 = vmatmul.msk.bf16.vlgmr.msrb.gmra.mxu0 %vm412_vm5, %v1604_v18 }
  0xb7   :  { %v396_v62 = vpack.c.bf16 %v1396_v60, %v1396_v60  ;;  %1157 = vst [vmem:[%s1862_s5 + $0x50] sm:$0x1f] %v1396_v60  ;;  %1318 = vmatmul.msk.bf16.vlgmr.msrb.gmra.mxu1 %vm412_vm5, %v1604_v18  ;;  %v303_v63 = vpop.f32.mrf.mxu2 }
  0xb8   :  { %v1398_v61 = vpop.eup %1397  ;;  %v327_v6 = vpop.f32.mrf.mxu0 }
  0xb9   :  { %v397_v0 = vpack.c.bf16 %v1398_v61, %v1398_v61  ;;  %1158 = vst [vmem:[%s1862_s5 + $0x58] sm:$0x1f] %v1398_v61  ;;  %v316_v1 = vpop.f32.mrf.mxu3  ;;  %v454_v3 = vand.u32 %v1591_v9, %v396_v62  ;;  %v340_v8 = vpop.f32.mrf.mxu1 }
  0xbb   :  { %v457_v4 = vand.u32 %v1591_v9, %v397_v0  ;;  %668 = vmatpush.bf16.msra.mxu2 %v454_v3 }
  0xbd   :  { %687 = vmatpush.bf16.msra.mxu3 %v457_v4 }
  0xbe   :  { %1320 = vmatmul.msk.bf16.vlgmr.msrb.gmra.mxu2 %vm412_vm5, %v1604_v18 }
  0xbf   :  { %1322 = vmatmul.msk.bf16.vlgmr.msrb.gmra.mxu3 %vm412_vm5, %v1604_v18  ;;  %v353_v5 = vpop.f32.mrf.mxu2 }
  0xc0   :  { %1399 = vtanh.f32 %v353_v5  ;;  %v329_v14 = vpop.f32.mrf.mxu0 }
  0xc1   :  { %v366_v7 = vpop.f32.mrf.mxu3  ;;  %v342_v17 = vpop.f32.mrf.mxu1 }
  0xc2   :  { %1401 = vtanh.f32 %v366_v7 }
  0xc3   :  { %1403 = vtanh.f32 %v327_v6 }
  0xc4   :  { %1405 = vtanh.f32 %v340_v8 }
  0xc6   :  { %v1400_v10 = vpop.eup %1399  ;;  %1317 = vmatmul.msk.bf16.gmra.mxu0 %vm412_vm5, %v1632_v38 }
  0xc7   :  { %1319 = vmatmul.msk.bf16.gmra.mxu1 %vm412_vm5, %v1632_v38  ;;  %v400_v12 = vpack.c.bf16 %v1400_v10, %v1400_v10  ;;  %1161 = vst [vmem:[%s1862_s5 + $0x70] sm:$0x1f] %v1400_v10  ;;  %v355_v13 = vpop.f32.mrf.mxu2 }
  0xc8   :  { %v1402_v11 = vpop.eup %1401 }
  0xc9   :  { %v1404_v15 = vpop.eup %1403  ;;  %v401_v16 = vpack.c.bf16 %v1402_v11, %v1402_v11  ;;  %1162 = vst [vmem:[%s1862_s5 + $0x78] sm:$0x1f] %v1402_v11  ;;  %v368_v2 = vpop.f32.mrf.mxu3  ;;  %v466_v20 = vand.u32 %v1591_v9, %v400_v12 }
  0xca   :  { %v1406_v19 = vpop.eup %1405  ;;  %1159 = vst [vmem:[%s1862_s5 + $0x60] sm:$0x1f] %v1404_v15  ;;  %v398_v22 = vpack.c.bf16 %v1404_v15, %v1404_v15 }
  0xcb   :  { %1160 = vst [vmem:[%s1862_s5 + $0x68] sm:$0x1f] %v1406_v19  ;;  %v469_v21 = vand.u32 %v1591_v9, %v401_v16  ;;  %v399_v23 = vpack.c.bf16 %v1406_v19, %v1406_v19  ;;  %744 = vmatpush.bf16.msrb.mxu2 %v466_v20 }
  0xcc   :  { %v460_v24 = vand.u32 %v1591_v9, %v398_v22 }
  0xcd   :  { %763 = vmatpush.bf16.msrb.mxu3 %v469_v21  ;;  %v463_v25 = vand.u32 %v1591_v9, %v399_v23 }
  0xce   :  { %1321 = vmatmul.msk.bf16.gmra.mxu2 %vm412_vm5, %v1632_v38  ;;  %706 = vmatpush.bf16.msrb.mxu0 %v460_v24 }
  0xcf   :  { %1323 = vmatmul.msk.bf16.gmra.mxu3 %vm412_vm5, %v1632_v38  ;;  %725 = vmatpush.bf16.msrb.mxu1 %v463_v25 }
  0xd6   :  { %1324 = vmatmul.msk.bf16.vlgmr.msra.gmra.mxu0 %vm412_vm5, %v1604_v18 }
  0xd7   :  { %1326 = vmatmul.msk.bf16.vlgmr.msra.gmra.mxu1 %vm412_vm5, %v1604_v18 }
  0xde   :  { %1328 = vmatmul.msk.bf16.vlgmr.msra.gmra.mxu2 %vm412_vm5, %v1604_v18 }
  0xdf   :  { %1330 = vmatmul.msk.bf16.vlgmr.msra.gmra.mxu3 %vm412_vm5, %v1604_v18 }
  0xe6   :  { %1325 = vmatmul.msk.bf16.gmra.mxu0 %vm412_vm5, %v1632_v38 }
  0xe7   :  { %1327 = vmatmul.msk.bf16.gmra.mxu1 %vm412_vm5, %v1632_v38 }
  0xee   :  { %1329 = vmatmul.msk.bf16.gmra.mxu2 %vm412_vm5, %v1632_v38 }
  0xef   :  { %1331 = vmatmul.msk.bf16.gmra.mxu3 %vm412_vm5, %v1632_v38 }
  0xf6   :  { %1332 = vmatmul.msk.bf16.vlgmr.msrb.gmra.mxu0 %vm412_vm5, %v1604_v18 }
  0xf7   :  { %1334 = vmatmul.msk.bf16.vlgmr.msrb.gmra.mxu1 %vm412_vm5, %v1604_v18 }
  0xfe   :  { %1336 = vmatmul.msk.bf16.vlgmr.msrb.gmra.mxu2 %vm412_vm5, %v1604_v18 }
  0xff   :  { %1338 = vmatmul.msk.bf16.vlgmr.msrb.gmra.mxu3 %vm412_vm5, %v1604_v18 }
 0x106   :  { %1333 = vmatmul.msk.bf16.gmra.mxu0 %vm412_vm5, %v1632_v38 }
 0x107   :  { %1335 = vmatmul.msk.bf16.gmra.mxu1 %vm412_vm5, %v1632_v38 }
 0x10e   :  { %1337 = vmatmul.msk.bf16.gmra.mxu2 %vm412_vm5, %v1632_v38 }
 0x10f   :  { %1339 = vmatmul.msk.bf16.gmra.mxu3 %vm412_vm5, %v1632_v38 }
 0x113   :  { %v480_v9 = vpop.f32.mrf.mxu0 }
 0x114   :  { %v499_v26 = vpop.f32.mrf.mxu1  ;;  %v775_v37 = vmul.f32 0.1, %v480_v9 }
 0x115   :  { %v776_v38 = vmul.f32 0.1, %v499_v26 }
 0x116   :  { %v839_v48 = vmax.f32 %v480_v9, %v775_v37 }
 0x117   :  { %v840_v51 = vmax.f32 %v499_v26, %v776_v38 }
 0x11b   :  { %v482_v27 = vpop.f32.mrf.mxu0 }
 0x11c   :  { %v501_v28 = vpop.f32.mrf.mxu1  ;;  %v791_v39 = vmul.f32 0.1, %v482_v27 }
 0x11d   :  { %v792_v43 = vmul.f32 0.1, %v501_v28 }
 0x11e   :  { %v855_v49 = vmax.f32 %v482_v27, %v791_v39 }
 0x11f   :  { %v856_v52 = vmax.f32 %v501_v28, %v792_v43 }
 0x120   :  { %v903_v57 = vpack.c.bf16 %v855_v49, %v839_v48 }
 0x121   :  { %v518_v29 = vpop.f32.mrf.mxu2  ;;  %v904_v59 = vpack.c.bf16 %v856_v52, %v840_v51 }
 0x122   :  { %v1731_v30 = vpop.f32.mrf.mxu3  ;;  %v777_v6 = vmul.f32 0.1, %v518_v29 }
 0x123   :  { %v485_v18 = vpop.f32.mrf.mxu0  ;;  %v778_v11 = vmul.f32 0.1, %v1731_v30 }
 0x124   :  { %v504_v31 = vpop.f32.mrf.mxu1  ;;  %v807_v32 = vmul.f32 0.1, %v485_v18  ;;  %v841_v17 = vmax.f32 %v518_v29, %v777_v6 }
 0x125   :  { %v808_v33 = vmul.f32 0.1, %v504_v31  ;;  %v842_v19 = vmax.f32 %v1731_v30, %v778_v11 }
 0x126   :  { %v871_v40 = vmax.f32 %v485_v18, %v807_v32 }
 0x127   :  { %v872_v44 = vmax.f32 %v504_v31, %v808_v33 }
 0x129   :  { %v520_v34 = vpop.f32.mrf.mxu2 }
 0x12a   :  { %v539_v35 = vpop.f32.mrf.mxu3  ;;  %v793_v63 = vmul.f32 0.1, %v520_v34 }
 0x12b   :  { %v487_v36 = vpop.f32.mrf.mxu0  ;;  %v794_v3 = vmul.f32 0.1, %v539_v35 }
 0x12c   :  { %v823_v41 = vmul.f32 0.1, %v487_v36  ;;  %v506_v42 = vpop.f32.mrf.mxu1  ;;  %v857_v14 = vmax.f32 %v520_v34, %v793_v63 }
 0x12d   :  { %v824_v45 = vmul.f32 0.1, %v506_v42  ;;  %v858_v16 = vmax.f32 %v539_v35, %v794_v3 }
 0x12e   :  { %v887_v46 = vmax.f32 %v487_v36, %v823_v41  ;;  %v905_v21 = vpack.c.bf16 %v857_v14, %v841_v17  ;;  %v1752_v41 = vld [vmem:[%s1864_s3] sm:$0x3] }
 0x12f   :  { %v888_v47 = vmax.f32 %v506_v42, %v824_v45  ;;  %v906_v23 = vpack.c.bf16 %v858_v16, %v842_v19 }
 0x130   :  { %v919_v50 = vpack.c.bf16 %v887_v46, %v871_v40 }
 0x131   :  { %v920_v53 = vpack.c.bf16 %v888_v47, %v872_v44  ;;  %v523_v54 = vpop.f32.mrf.mxu2 }
 0x132   :  { %v542_v55 = vpop.f32.mrf.mxu3  ;;  %945 = vmatpush.bf16.msra.mxu0 %v919_v50  ;;  %v809_v60 = vmul.f32 0.1, %v523_v54 }
 0x133   :  { %958 = vmatpush.bf16.msra.mxu1 %v920_v53  ;;  %v1733_v56 = vpop.f32.mrf.mxu0  ;;  %v810_v61 = vmul.f32 0.1, %v542_v55 }
 0x134   :  { %v1735_v58 = vpop.f32.mrf.mxu1  ;;  %v873_v7 = vmax.f32 %v523_v54, %v809_v60  ;;  %v779_v30 = vmul.f32 0.1, %v1733_v56 }
 0x135   :  { %v874_v12 = vmax.f32 %v542_v55, %v810_v61  ;;  %v780_v34 = vmul.f32 0.1, %v1735_v58 }
 0x136   :  { %946 = vmatpush.bf16.msra.mxu0 %v903_v57  ;;  %v843_v42 = vmax.f32 %v1733_v56, %v779_v30 }
 0x137   :  { %959 = vmatpush.bf16.msra.mxu1 %v904_v59  ;;  %v844_v44 = vmax.f32 %v1735_v58, %v780_v34 }
 0x139   :  { %v525_v62 = vpop.f32.mrf.mxu2  ;;  %1340 = vmatmul.msk.bf16.vlgmr.msra.gmra.mxu0 %vm935_vm6, %v1752_v41 }
 0x13a   :  { %v825_v0 = vmul.f32 0.1, %v525_v62  ;;  %v544_v1 = vpop.f32.mrf.mxu3  ;;  %1341 = vmatmul.msk.bf16.vlgmr.msra.gmra.mxu1 %vm935_vm6, %v1752_v41 }
 0x13b   :  { %v826_v4 = vmul.f32 0.1, %v544_v1  ;;  %v558_v5 = vpop.f32.mrf.mxu0 }
 0x13c   :  { %v889_v8 = vmax.f32 %v525_v62, %v825_v0  ;;  %v577_v10 = vpop.f32.mrf.mxu1  ;;  %v795_v18 = vmul.f32 0.1, %v558_v5 }
 0x13d   :  { %v890_v13 = vmax.f32 %v544_v1, %v826_v4  ;;  %v796_v35 = vmul.f32 0.1, %v577_v10 }
 0x13e   :  { %v921_v15 = vpack.c.bf16 %v889_v8, %v873_v7  ;;  %v859_v38 = vmax.f32 %v558_v5, %v795_v18 }
 0x13f   :  { %v922_v2 = vpack.c.bf16 %v890_v13, %v874_v12  ;;  %v860_v45 = vmax.f32 %v577_v10, %v796_v35 }
 0x140   :  { %971 = vmatpush.bf16.msra.mxu2 %v921_v15  ;;  %v907_v50 = vpack.c.bf16 %v859_v38, %v843_v42 }
 0x141   :  { %984 = vmatpush.bf16.msra.mxu3 %v922_v2  ;;  %v1739_v20 = vpop.f32.mrf.mxu2  ;;  %v908_v52 = vpack.c.bf16 %v860_v45, %v844_v44 }
 0x142   :  { %v1741_v22 = vpop.f32.mrf.mxu3  ;;  %v781_v62 = vmul.f32 0.1, %v1739_v20 }
 0x143   :  { %v561_v24 = vpop.f32.mrf.mxu0  ;;  %v782_v3 = vmul.f32 0.1, %v1741_v22 }
 0x144   :  { %972 = vmatpush.bf16.msra.mxu2 %v905_v21  ;;  %v580_v25 = vpop.f32.mrf.mxu1  ;;  %v811_v9 = vmul.f32 0.1, %v561_v24  ;;  %v845_v11 = vmax.f32 %v1739_v20, %v781_v62 }
 0x145   :  { %985 = vmatpush.bf16.msra.mxu3 %v906_v23  ;;  %v812_v26 = vmul.f32 0.1, %v580_v25  ;;  %v846_v12 = vmax.f32 %v1741_v22, %v782_v3 }
 0x146   :  { %v875_v31 = vmax.f32 %v561_v24, %v811_v9 }
 0x147   :  { %v876_v36 = vmax.f32 %v580_v25, %v812_v26  ;;  %1342 = vmatmul.msk.bf16.vlgmr.msra.gmra.mxu2 %vm935_vm6, %v1752_v41 }
 0x148   :  { %1343 = vmatmul.msk.bf16.vlgmr.msra.gmra.mxu3 %vm935_vm6, %v1752_v41 }
 0x149   :  { %v1743_v27 = vpop.f32.mrf.mxu2 }
 0x14a   :  { %v1745_v28 = vpop.f32.mrf.mxu3  ;;  %v797_v56 = vmul.f32 0.1, %v1743_v27 }
 0x14b   :  { %v563_v29 = vpop.f32.mrf.mxu0  ;;  %v798_v59 = vmul.f32 0.1, %v1745_v28 }
 0x14c   :  { %v827_v32 = vmul.f32 0.1, %v563_v29  ;;  %v582_v33 = vpop.f32.mrf.mxu1  ;;  %v861_v6 = vmax.f32 %v1743_v27, %v797_v56 }
 0x14d   :  { %v828_v37 = vmul.f32 0.1, %v582_v33  ;;  %v862_v8 = vmax.f32 %v1745_v28, %v798_v59 }
 0x14e   :  { %v891_v39 = vmax.f32 %v563_v29, %v827_v32  ;;  %v909_v14 = vpack.c.bf16 %v861_v6, %v845_v11 }
 0x14f   :  { %v892_v40 = vmax.f32 %v582_v33, %v828_v37  ;;  %v910_v16 = vpack.c.bf16 %v862_v8, %v846_v12 }
 0x150   :  { %v923_v43 = vpack.c.bf16 %v891_v39, %v875_v31 }
 0x151   :  { %v924_v46 = vpack.c.bf16 %v892_v40, %v876_v36  ;;  %v599_v47 = vpop.f32.mrf.mxu2 }
 0x152   :  { %v618_v48 = vpop.f32.mrf.mxu3  ;;  %997 = vmatpush.bf16.msrb.mxu0 %v923_v43  ;;  %v813_v53 = vmul.f32 0.1, %v599_v47 }
 0x153   :  { %1010 = vmatpush.bf16.msrb.mxu1 %v924_v46  ;;  %v1764_v49 = vpop.f32.mrf.mxu0  ;;  %v814_v54 = vmul.f32 0.1, %v618_v48 }
 0x154   :  { %v1766_v51 = vpop.f32.mrf.mxu1  ;;  %v877_v63 = vmax.f32 %v599_v47, %v813_v53  ;;  %v783_v24 = vmul.f32 0.1, %v1764_v49 }
 0x155   :  { %v878_v4 = vmax.f32 %v618_v48, %v814_v54  ;;  %v784_v28 = vmul.f32 0.1, %v1766_v51 }
 0x156   :  { %998 = vmatpush.bf16.msrb.mxu0 %v907_v50  ;;  %v847_v33 = vmax.f32 %v1764_v49, %v783_v24 }
 0x157   :  { %1011 = vmatpush.bf16.msrb.mxu1 %v908_v52  ;;  %v848_v36 = vmax.f32 %v1766_v51, %v784_v28 }
 0x159   :  { %v601_v55 = vpop.f32.mrf.mxu2  ;;  %1344 = vmatmul.msk.bf16.vlgmr.msrb.gmra.mxu0 %vm935_vm6, %v1752_v41 }
 0x15a   :  { %v829_v57 = vmul.f32 0.1, %v601_v55  ;;  %v620_v58 = vpop.f32.mrf.mxu3  ;;  %1345 = vmatmul.msk.bf16.vlgmr.msrb.gmra.mxu1 %vm935_vm6, %v1752_v41 }
 0x15b   :  { %v830_v60 = vmul.f32 0.1, %v620_v58  ;;  %v634_v61 = vpop.f32.mrf.mxu0 }
 0x15c   :  { %v893_v0 = vmax.f32 %v601_v55, %v829_v57  ;;  %v653_v1 = vpop.f32.mrf.mxu1  ;;  %v799_v25 = vmul.f32 0.1, %v634_v61 }
 0x15d   :  { %v894_v5 = vmax.f32 %v620_v58, %v830_v60  ;;  %v800_v29 = vmul.f32 0.1, %v653_v1 }
 0x15e   :  { %v925_v7 = vpack.c.bf16 %v893_v0, %v877_v63  ;;  %v863_v34 = vmax.f32 %v634_v61, %v799_v25 }
 0x15f   :  { %v926_v10 = vpack.c.bf16 %v894_v5, %v878_v4  ;;  %v864_v37 = vmax.f32 %v653_v1, %v800_v29 }
 0x160   :  { %1023 = vmatpush.bf16.msrb.mxu2 %v925_v7  ;;  %v911_v43 = vpack.c.bf16 %v863_v34, %v847_v33 }
 0x161   :  { %1036 = vmatpush.bf16.msrb.mxu3 %v926_v10  ;;  %v1778_v13 = vpop.f32.mrf.mxu2  ;;  %v912_v45 = vpack.c.bf16 %v864_v37, %v848_v36 }
 0x162   :  { %v1782_v15 = vpop.f32.mrf.mxu3  ;;  %v785_v55 = vmul.f32 0.1, %v1778_v13 }
 0x163   :  { %v637_v2 = vpop.f32.mrf.mxu0  ;;  %v786_v59 = vmul.f32 0.1, %v1782_v15 }
 0x164   :  { %1024 = vmatpush.bf16.msrb.mxu2 %v909_v14  ;;  %v656_v17 = vpop.f32.mrf.mxu1  ;;  %v815_v19 = vmul.f32 0.1, %v637_v2  ;;  %v849_v3 = vmax.f32 %v1778_v13, %v785_v55 }
 0x165   :  { %1037 = vmatpush.bf16.msrb.mxu3 %v910_v16  ;;  %v816_v20 = vmul.f32 0.1, %v656_v17  ;;  %v850_v4 = vmax.f32 %v1782_v15, %v786_v59 }
 0x166   :  { %v879_v9 = vmax.f32 %v637_v2, %v815_v19 }
 0x167   :  { %1346 = vmatmul.msk.bf16.vlgmr.msrb.gmra.mxu2 %vm935_vm6, %v1752_v41  ;;  %v880_v30 = vmax.f32 %v656_v17, %v816_v20 }
 0x168   :  { %1347 = vmatmul.msk.bf16.vlgmr.msrb.gmra.mxu3 %vm935_vm6, %v1752_v41 }
 0x169   :  { %v672_v21 = vpop.f32.mrf.mxu2 }
 0x16a   :  { %v691_v22 = vpop.f32.mrf.mxu3  ;;  %v801_v49 = vmul.f32 0.1, %v672_v21 }
 0x16b   :  { %v639_v23 = vpop.f32.mrf.mxu0  ;;  %v802_v52 = vmul.f32 0.1, %v691_v22 }
 0x16c   :  { %v831_v26 = vmul.f32 0.1, %v639_v23  ;;  %v658_v27 = vpop.f32.mrf.mxu1  ;;  %v865_v62 = vmax.f32 %v672_v21, %v801_v49 }
 0x16d   :  { %v832_v18 = vmul.f32 0.1, %v658_v27  ;;  %v866_v0 = vmax.f32 %v691_v22, %v802_v52 }
 0x16e   :  { %v895_v31 = vmax.f32 %v639_v23, %v831_v26  ;;  %v913_v6 = vpack.c.bf16 %v865_v62, %v849_v3 }
 0x16f   :  { %v896_v32 = vmax.f32 %v658_v27, %v832_v18  ;;  %v914_v8 = vpack.c.bf16 %v866_v0, %v850_v4 }
 0x170   :  { %v927_v35 = vpack.c.bf16 %v895_v31, %v879_v9 }
 0x171   :  { %v928_v39 = vpack.c.bf16 %v896_v32, %v880_v30  ;;  %v675_v40 = vpop.f32.mrf.mxu2 }
 0x172   :  { %v694_v42 = vpop.f32.mrf.mxu3  ;;  %1049 = vmatpush.bf16.msra.mxu0 %v927_v35  ;;  %v817_v46 = vmul.f32 0.1, %v675_v40 }
 0x173   :  { %1062 = vmatpush.bf16.msra.mxu1 %v928_v39  ;;  %v1792_v38 = vpop.f32.mrf.mxu0  ;;  %v818_v47 = vmul.f32 0.1, %v694_v42 }
 0x174   :  { %v1794_v44 = vpop.f32.mrf.mxu1  ;;  %v881_v56 = vmax.f32 %v675_v40, %v817_v46  ;;  %v787_v2 = vmul.f32 0.1, %v1792_v38 }
 0x175   :  { %v882_v60 = vmax.f32 %v694_v42, %v818_v47  ;;  %v788_v22 = vmul.f32 0.1, %v1794_v44 }
 0x176   :  { %1050 = vmatpush.bf16.msra.mxu0 %v911_v43  ;;  %v851_v27 = vmax.f32 %v1792_v38, %v787_v2 }
 0x177   :  { %1063 = vmatpush.bf16.msra.mxu1 %v912_v45  ;;  %v852_v30 = vmax.f32 %v1794_v44, %v788_v22 }
 0x179   :  { %v677_v48 = vpop.f32.mrf.mxu2  ;;  %1348 = vmatmul.msk.bf16.vlgmr.msra.gmra.mxu0 %vm935_vm6, %v1752_v41 }
 0x17a   :  { %v833_v50 = vmul.f32 0.1, %v677_v48  ;;  %v696_v51 = vpop.f32.mrf.mxu3  ;;  %1349 = vmatmul.msk.bf16.vlgmr.msra.gmra.mxu1 %vm935_vm6, %v1752_v41 }
 0x17b   :  { %v834_v53 = vmul.f32 0.1, %v696_v51  ;;  %v710_v54 = vpop.f32.mrf.mxu0 }
 0x17c   :  { %v897_v57 = vmax.f32 %v677_v48, %v833_v50  ;;  %v729_v58 = vpop.f32.mrf.mxu1  ;;  %v803_v17 = vmul.f32 0.1, %v710_v54 }
 0x17d   :  { %v898_v61 = vmax.f32 %v696_v51, %v834_v53  ;;  %v804_v23 = vmul.f32 0.1, %v729_v58 }
 0x17e   :  { %v929_v63 = vpack.c.bf16 %v897_v57, %v881_v56  ;;  %v867_v28 = vmax.f32 %v710_v54, %v803_v17 }
 0x17f   :  { %v930_v1 = vpack.c.bf16 %v898_v61, %v882_v60  ;;  %v868_v18 = vmax.f32 %v729_v58, %v804_v23 }
 0x180   :  { %1075 = vmatpush.bf16.msra.mxu2 %v929_v63  ;;  %v915_v34 = vpack.c.bf16 %v867_v28, %v851_v27 }
 0x181   :  { %1088 = vmatpush.bf16.msra.mxu3 %v930_v1  ;;  %v1804_v5 = vpop.f32.mrf.mxu2  ;;  %v916_v35 = vpack.c.bf16 %v868_v18, %v852_v30 }
 0x182   :  { %v1806_v7 = vpop.f32.mrf.mxu3  ;;  %v789_v45 = vmul.f32 0.1, %v1804_v5 }
 0x183   :  { %v713_v10 = vpop.f32.mrf.mxu0  ;;  %v790_v48 = vmul.f32 0.1, %v1806_v7 }
 0x184   :  { %1076 = vmatpush.bf16.msra.mxu2 %v913_v6  ;;  %v732_v11 = vpop.f32.mrf.mxu1  ;;  %v819_v12 = vmul.f32 0.1, %v713_v10  ;;  %v853_v55 = vmax.f32 %v1804_v5, %v789_v45 }
 0x185   :  { %1089 = vmatpush.bf16.msra.mxu3 %v914_v8  ;;  %v820_v13 = vmul.f32 0.1, %v732_v11  ;;  %v854_v56 = vmax.f32 %v1806_v7, %v790_v48 }
 0x186   :  { %v883_v19 = vmax.f32 %v713_v10, %v819_v12 }
 0x187   :  { %1350 = vmatmul.msk.bf16.vlgmr.msra.gmra.mxu2 %vm935_vm6, %v1752_v41  ;;  %v884_v24 = vmax.f32 %v732_v11, %v820_v13 }
 0x188   :  { %1351 = vmatmul.msk.bf16.vlgmr.msra.gmra.mxu3 %vm935_vm6, %v1752_v41 }
 0x189   :  { %v748_v14 = vpop.f32.mrf.mxu2 }
 0x18a   :  { %v767_v15 = vpop.f32.mrf.mxu3  ;;  %v805_v40 = vmul.f32 0.1, %v748_v14 }
 0x18b   :  { %v715_v16 = vpop.f32.mrf.mxu0  ;;  %v806_v43 = vmul.f32 0.1, %v767_v15 }
 0x18c   :  { %v835_v20 = vmul.f32 0.1, %v715_v16  ;;  %v734_v21 = vpop.f32.mrf.mxu1  ;;  %v869_v51 = vmax.f32 %v748_v14, %v805_v40 }
 0x18d   :  { %v836_v25 = vmul.f32 0.1, %v734_v21  ;;  %v870_v53 = vmax.f32 %v767_v15, %v806_v43 }
 0x18e   :  { %v899_v9 = vmax.f32 %v715_v16, %v835_v20  ;;  %v917_v57 = vpack.c.bf16 %v869_v51, %v853_v55 }
 0x18f   :  { %v900_v26 = vmax.f32 %v734_v21, %v836_v25  ;;  %v918_v58 = vpack.c.bf16 %v870_v53, %v854_v56 }
 0x190   :  { %v931_v29 = vpack.c.bf16 %v899_v9, %v883_v19 }
 0x191   :  { %v932_v31 = vpack.c.bf16 %v900_v26, %v884_v24  ;;  %v751_v32 = vpop.f32.mrf.mxu2 }
 0x192   :  { %v770_v33 = vpop.f32.mrf.mxu3  ;;  %1101 = vmatpush.bf16.msrb.mxu0 %v931_v29  ;;  %v821_v36 = vmul.f32 0.1, %v751_v32 }
 0x193   :  { %1114 = vmatpush.bf16.msrb.mxu1 %v932_v31  ;;  %v822_v37 = vmul.f32 0.1, %v770_v33 }
 0x194   :  { %v885_v46 = vmax.f32 %v751_v32, %v821_v36 }
 0x195   :  { %v886_v49 = vmax.f32 %v770_v33, %v822_v37 }
 0x196   :  { %1102 = vmatpush.bf16.msrb.mxu0 %v915_v34 }
 0x197   :  { %1115 = vmatpush.bf16.msrb.mxu1 %v916_v35 }
 0x199   :  { %v753_v39 = vpop.f32.mrf.mxu2  ;;  %1352 = vmatmul.msk.bf16.vlgmr.msrb.gmra.mxu0 %vm935_vm6, %v1752_v41 }
 0x19a   :  { %v837_v42 = vmul.f32 0.1, %v753_v39  ;;  %v772_v38 = vpop.f32.mrf.mxu3  ;;  %1353 = vmatmul.msk.bf16.vlgmr.msrb.gmra.mxu1 %vm935_vm6, %v1752_v41 }
 0x19b   :  { %v838_v44 = vmul.f32 0.1, %v772_v38 }
 0x19c   :  { %v901_v47 = vmax.f32 %v753_v39, %v837_v42 }
 0x19d   :  { %v902_v50 = vmax.f32 %v772_v38, %v838_v44 }
 0x19e   :  { %v933_v52 = vpack.c.bf16 %v901_v47, %v885_v46 }
 0x19f   :  { %v934_v54 = vpack.c.bf16 %v902_v50, %v886_v49 }
 0x1a0   :  { %1127 = vmatpush.bf16.msrb.mxu2 %v933_v52 }
 0x1a1   :  { %1140 = vmatpush.bf16.msrb.mxu3 %v934_v54 }
 0x1a4   :  { %1128 = vmatpush.bf16.msrb.mxu2 %v917_v57 }
 0x1a5   :  { %1141 = vmatpush.bf16.msrb.mxu3 %v918_v58 }
 0x1a7   :  { %1354 = vmatmul.msk.bf16.vlgmr.msrb.gmra.mxu2 %vm935_vm6, %v1752_v41 }
 0x1a8   :  { %1355 = vmatmul.msk.bf16.vlgmr.msrb.gmra.mxu3 %vm935_vm6, %v1752_v41 }
 0x1b6   :  { %v948_v59 = vpop.f32.mrf.mxu0 }
 0x1b7   :  { %v961_v60 = vpop.f32.mrf.mxu1 }
 0x1b8   :  { %v1179_v61 = vrot.slane %v961_v60, 4 }
 0x1ba   :  { %v1188_v62 = vsel %vm1187_vm7, %v948_v59, %v1179_v61 }
 0x1bb   :  { %1204 = vst [vmem:[%s1865_s4] sm:$0x77] %v1188_v62 }
 0x1be   :  { %v950_v3 = vpop.f32.mrf.mxu0 }
 0x1bf   :  { %v963_v4 = vpop.f32.mrf.mxu1 }
 0x1ca   :  { %v974_v63 = vpop.f32.mrf.mxu2 }
 0x1cb   :  { %v987_v0 = vpop.f32.mrf.mxu3 }
 0x1cc   :  { %v1180_v1 = vrot.slane %v987_v0, 4 }
 0x1ce   :  { %v1189_v5 = vsel %vm1187_vm7, %v974_v63, %v1180_v1 }
 0x1cf   :  { %1205 = vst [vmem:[%s1865_s4 + $0x8] sm:$0x77] %v1189_v5 }
 0x1d2   :  { %v976_v41 = vpop.f32.mrf.mxu2 }
 0x1d3   :  { %v989_v6 = vpop.f32.mrf.mxu3 }
 0x1d6   :  { %v1000_v7 = vpop.f32.mrf.mxu0 }
 0x1d7   :  { %v1013_v8 = vpop.f32.mrf.mxu1 }
 0x1d8   :  { %v1181_v10 = vrot.slane %v1013_v8, 4 }
 0x1da   :  { %v1190_v11 = vsel %vm1187_vm7, %v1000_v7, %v1181_v10 }
 0x1db   :  { %1206 = vst [vmem:[%s1865_s4 + $0x10] sm:$0x77] %v1190_v11 }
 0x1de   :  { %v1002_v12 = vpop.f32.mrf.mxu0 }
 0x1df   :  { %v1015_v13 = vpop.f32.mrf.mxu1 }
 0x1ea   :  { %v1026_v14 = vpop.f32.mrf.mxu2 }
 0x1eb   :  { %v1039_v15 = vpop.f32.mrf.mxu3 }
 0x1ec   :  { %v1182_v16 = vrot.slane %v1039_v15, 4 }
 0x1ee   :  { %v1191_v2 = vsel %vm1187_vm7, %v1026_v14, %v1182_v16 }
 0x1ef   :  { %1207 = vst [vmem:[%s1865_s4 + $0x18] sm:$0x77] %v1191_v2 }
 0x1f2   :  { %v1028_v17 = vpop.f32.mrf.mxu2 }
 0x1f3   :  { %v1041_v19 = vpop.f32.mrf.mxu3 }
 0x1f6   :  { %v1052_v20 = vpop.f32.mrf.mxu0 }
 0x1f7   :  { %v1065_v21 = vpop.f32.mrf.mxu1 }
 0x1f8   :  { %v1183_v22 = vrot.slane %v1065_v21, 4 }
 0x1fa   :  { %v1192_v23 = vsel %vm1187_vm7, %v1052_v20, %v1183_v22 }
 0x1fb   :  { %1208 = vst [vmem:[%s1865_s4 + $0x20] sm:$0x77] %v1192_v23 }
 0x1fe   :  { %v1054_v24 = vpop.f32.mrf.mxu0 }
 0x1ff   :  { %v1067_v25 = vpop.f32.mrf.mxu1 }
 0x20a   :  { %v1078_v9 = vpop.f32.mrf.mxu2 }
 0x20b   :  { %v1091_v26 = vpop.f32.mrf.mxu3 }
 0x20c   :  { %v1184_v27 = vrot.slane %v1091_v26, 4 }
 0x20e   :  { %v1193_v28 = vsel %vm1187_vm7, %v1078_v9, %v1184_v27 }
 0x20f   :  { %1209 = vst [vmem:[%s1865_s4 + $0x28] sm:$0x77] %v1193_v28 }
 0x212   :  { %v1080_v29 = vpop.f32.mrf.mxu2 }
 0x213   :  { %v1093_v30 = vpop.f32.mrf.mxu3 }
 0x216   :  { %v1104_v18 = vpop.f32.mrf.mxu0 }
 0x217   :  { %v1117_v31 = vpop.f32.mrf.mxu1 }
 0x218   :  { %v1185_v32 = vrot.slane %v1117_v31, 4 }
 0x21a   :  { %v1194_v33 = vsel %vm1187_vm7, %v1104_v18, %v1185_v32 }
 0x21b   :  { %1210 = vst [vmem:[%s1865_s4 + $0x30] sm:$0x77] %v1194_v33 }
 0x21e   :  { %v1106_v34 = vpop.f32.mrf.mxu0 }
 0x21f   :  { %v1119_v35 = vpop.f32.mrf.mxu1 }
 0x22a   :  { %v1130_v36 = vpop.f32.mrf.mxu2 }
 0x22b   :  { %v1143_v37 = vpop.f32.mrf.mxu3 }
 0x22c   :  { %v1186_v39 = vrot.slane %v1143_v37, 4 }
 0x22e   :  { %v1195_v40 = vsel %vm1187_vm7, %v1130_v36, %v1186_v39 }
 0x22f   :  { %1211 = vst [vmem:[%s1865_s4 + $0x38] sm:$0x77] %v1195_v40 }
 0x232   :  { %v1132_v42 = vpop.f32.mrf.mxu2 }
 0x233   :  { %v1145_v38 = vpop.f32.mrf.mxu3 }

</bundles_post_ra>
